<compile_context>
chip_gen: v7x
topology: tpu7x:2x2x1
jax: 0.10.0
libtpu: 0.0.40
codegen_flags: <defaults>
</compile_context>

<pallas_src>
import jax
import jax.numpy as jnp
from jax.experimental import pallas as pl
from jax.experimental.pallas import tpu as pltpu

# Problem sizes (match nn.Conv2d(3, 3, (3, 3), stride=1, padding=0, bias=True)).
C_IN = 3
C_OUT = 3
KH = 3
KW = 3


def _round_up(x, m):
    return (x + m - 1) // m * m


def _cdiv(a, b):
    return -(-a // b)


def _conv_kernel(w_ref, b_ref, x_ref, o_ref):
    """Direct 3x3 convolution on lane-packed images.

    w_ref : (C_OUT*C_IN*KH*KW,)        SMEM f32 (flattened OIHW)
    b_ref : (C_OUT,)                   SMEM f32
    x_ref : (TB, C_IN, H_PAD, W_PACK)  VMEM, floor(128/W) images packed per lane group
    o_ref : (TB, C_OUT, OH, W_PACK)    VMEM
    """
    tb = x_ref.shape[0]
    w_pack = x_ref.shape[-1]
    oh = o_ref.shape[-2]

    # Hoist the 27 weight and 3 bias scalar reads out of all per-image loops:
    # 30 sld per grid step instead of per image.
    wv = [[[[w_ref[((co * C_IN + ci) * KH + kh) * KW + kw]
             for kw in range(KW)] for kh in range(KH)]
           for ci in range(C_IN)] for co in range(C_OUT)]
    bv = [b_ref[co] for co in range(C_OUT)]

    for t in range(tb):                      # static unroll over lane-groups in the block
        acc = [None] * C_OUT                 # only 3 persistent accumulators stay live
        for ci in range(C_IN):
            plane = x_ref[t, ci]             # (H_PAD, W_PACK), loaded once per channel
            for kw in range(KW):
                # Left lane-shift by kw via the XLU (free slot vs VPU/vst):
                # rolled[r, c] = plane[r, c + kw]; wrapped columns only land in the
                # last KW-1 columns of each image segment (invalid outputs) or in the
                # lane padding, both discarded by the wrapper.
                p_kw = plane if kw == 0 else pltpu.roll(plane, shift=w_pack - kw, axis=1)
                for kh in range(KH):
                    patch = p_kw[kh:kh + oh, :]          # (OH, W_PACK), consumed now
                    for co in range(C_OUT):
                        term = patch * wv[co][ci][kh][kw]
                        acc[co] = term if acc[co] is None else acc[co] + term
        for co in range(C_OUT):
            o_ref[t, co] = (acc[co] + bv[co]).astype(o_ref.dtype)


def conv2d_pallas(x, weight, bias):
    """x: (N, 3, H, W); weight: (3, 3, 3, 3) (OIHW); bias: (3,).  Returns (N,3,H-2,W-2)."""
    n, c_in, h, w = x.shape
    assert c_in == C_IN and weight.shape == (C_OUT, C_IN, KH, KW)
    oh, ow = h - KH + 1, w - KW + 1
    assert oh >= 1 and ow >= 1

    h_pad = _round_up(h, 8)

    # Lane packing: G = floor(128/W) images share one 128-lane group (G=1 + lane pad
    # for W > 128).  Keeps vregs dense with real data instead of zero padding.
    if w <= 128:
        g = 128 // w
        w_pack = 128
    else:
        g = 1
        w_pack = _round_up(w, 128)
    ng = _cdiv(n, g)                                   # lane groups for the real batch

    # Lane-groups per grid step: amortize per-step overhead with large blocks, but keep
    # the double-buffered in+out footprint <= ~16 MiB (fits v7x's 32 MiB scoped VMEM),
    # and keep >=2 grid steps when possible so v7x's 2 TensorCores both get work.
    bytes_per_group = (C_IN * h_pad + C_OUT * oh) * w_pack * x.dtype.itemsize
    tb_vmem = max(1, (8 * 1024 * 1024) // bytes_per_group)
    tb = max(1, min(tb_vmem, 16, _cdiv(ng, 2) if ng > 1 else 1))
    steps = _cdiv(ng, tb)
    ng_pad = steps * tb

    # Pack: (N, C, H, W) -> pad batch/rows -> (NG, G, C, H_pad, W) -> (NG, C, H_pad, G*W)
    # -> lane-pad to (NG, C, H_pad, W_PACK).
    x_p = jnp.pad(x, ((0, ng_pad * g - n), (0, 0), (0, h_pad - h), (0, 0)))
    x_p = x_p.reshape(ng_pad, g, C_IN, h_pad, w)
    x_p = jnp.moveaxis(x_p, 1, 3).reshape(ng_pad, C_IN, h_pad, g * w)
    if w_pack > g * w:
        x_p = jnp.pad(x_p, ((0, 0), (0, 0), (0, 0), (0, w_pack - g * w)))

    w_flat = weight.reshape(-1).astype(jnp.float32)    # (27,) OIHW row-major
    b = bias.astype(jnp.float32)

    out_packed = pl.pallas_call(
        _conv_kernel,
        out_shape=jax.ShapeDtypeStruct((ng_pad, C_OUT, oh, w_pack), x.dtype),
        grid=(steps,),
        in_specs=[
            pl.BlockSpec(memory_space=pltpu.MemorySpace.SMEM),               # weights
            pl.BlockSpec(memory_space=pltpu.MemorySpace.SMEM),               # bias
            pl.BlockSpec((tb, C_IN, h_pad, w_pack), lambda i: (i, 0, 0, 0)),  # x
        ],
        out_specs=pl.BlockSpec((tb, C_OUT, oh, w_pack), lambda i: (i, 0, 0, 0)),
        compiler_params=pltpu.CompilerParams(
            dimension_semantics=("parallel",),
            # Max double-buffered footprint is <= 2 * 8 MiB = 16 MiB by construction.
            vmem_limit_bytes=32 * 1024 * 1024,
        ),
    )(w_flat, b, x_p)

    # Unpack: drop lane padding, split the packed image segments, drop each segment's
    # last KW-1 (contaminated / invalid) columns and the batch padding.
    out = out_packed[:, :, :, :g * w].reshape(ng_pad, C_OUT, oh, g, w)
    out = jnp.moveaxis(out, 3, 1).reshape(ng_pad * g, C_OUT, oh, w)
    return out[:n, :, :, :ow]


if __name__ == "__main__":
    key = jax.random.PRNGKey(0)
    kx, k_w, k_b = jax.random.split(key, 3)

    # Small deterministic example consistent with the module: NCHW, 3 channels.
    N, H, W = 2, 16, 16
    x = jax.random.normal(kx, (N, C_IN, H, W), dtype=jnp.float32)

    # Deterministic PyTorch-style init: uniform(-1/sqrt(fan_in), 1/sqrt(fan_in)).
    fan_in = C_IN * KH * KW
    bound = 1.0 / (fan_in ** 0.5)
    weight = jax.random.uniform(k_w, (C_OUT, C_IN, KH, KW), jnp.float32, -bound, bound)
    bias = jax.random.uniform(k_b, (C_OUT,), jnp.float32, -bound, bound)

    out = jax.jit(conv2d_pallas)(x, weight, bias)
    out = jax.block_until_ready(out)

    # Sanity-check against XLA's conv (same NCHW / OIHW semantics as PyTorch).
    ref = jax.lax.conv_general_dilated(
        x, weight, window_strides=(1, 1), padding="VALID",
        dimension_numbers=("NCHW", "OIHW", "NCHW"),
    ) + bias[None, :, None, None]
    assert out.shape == (N, C_OUT, H - 2, W - 2)
    assert jnp.allclose(out, ref, atol=1e-5, rtol=1e-5)

    print("KERNEL_OK")
</pallas_src>

<mosaic_0001>
module attributes {stable_mosaic.version = 11 : i64} {
  func.func @_conv_kernel(%arg0: i32, %arg1: memref<81xf32, #tpu.memory_space<smem>>, %arg2: memref<3xf32, #tpu.memory_space<smem>>, %arg3: memref<1x3x16x128xf32, #tpu.memory_space<vmem>>, %arg4: memref<1x3x14x128xf32, #tpu.memory_space<vmem>>) attributes {dimension_semantics = [#tpu.dimension_semantics<parallel>], iteration_bounds = array<i64: 1>, scalar_prefetch = 0 : i64, scratch_operands = 0 : i64, tpu.core_type = #tpu.core_type<tc>, window_params = [{transform_indices = @transform_0, window_bounds = array<i64: 81>}, {transform_indices = @transform_1, window_bounds = array<i64: 3>}, {transform_indices = @transform_2, window_bounds = array<i64: 1, 3, 16, 128>}, {transform_indices = @transform_3, window_bounds = array<i64: 1, 3, 14, 128>}]} {
    %c0 = arith.constant 0 : index
    %0 = memref.load %arg1[%c0] : memref<81xf32, #tpu.memory_space<smem>>
    %c1 = arith.constant 1 : index
    %1 = memref.load %arg1[%c1] : memref<81xf32, #tpu.memory_space<smem>>
    %c2 = arith.constant 2 : index
    %2 = memref.load %arg1[%c2] : memref<81xf32, #tpu.memory_space<smem>>
    %c3 = arith.constant 3 : index
    %3 = memref.load %arg1[%c3] : memref<81xf32, #tpu.memory_space<smem>>
    %c4 = arith.constant 4 : index
    %4 = memref.load %arg1[%c4] : memref<81xf32, #tpu.memory_space<smem>>
    %c5 = arith.constant 5 : index
    %5 = memref.load %arg1[%c5] : memref<81xf32, #tpu.memory_space<smem>>
    %c6 = arith.constant 6 : index
    %6 = memref.load %arg1[%c6] : memref<81xf32, #tpu.memory_space<smem>>
    %c7 = arith.constant 7 : index
    %7 = memref.load %arg1[%c7] : memref<81xf32, #tpu.memory_space<smem>>
    %c8 = arith.constant 8 : index
    %8 = memref.load %arg1[%c8] : memref<81xf32, #tpu.memory_space<smem>>
    %c9 = arith.constant 9 : index
    %9 = memref.load %arg1[%c9] : memref<81xf32, #tpu.memory_space<smem>>
    %c10 = arith.constant 10 : index
    %10 = memref.load %arg1[%c10] : memref<81xf32, #tpu.memory_space<smem>>
    %c11 = arith.constant 11 : index
    %11 = memref.load %arg1[%c11] : memref<81xf32, #tpu.memory_space<smem>>
    %c12 = arith.constant 12 : index
    %12 = memref.load %arg1[%c12] : memref<81xf32, #tpu.memory_space<smem>>
    %c13 = arith.constant 13 : index
    %13 = memref.load %arg1[%c13] : memref<81xf32, #tpu.memory_space<smem>>
    %c14 = arith.constant 14 : index
    %14 = memref.load %arg1[%c14] : memref<81xf32, #tpu.memory_space<smem>>
    %c15 = arith.constant 15 : index
    %15 = memref.load %arg1[%c15] : memref<81xf32, #tpu.memory_space<smem>>
    %c16 = arith.constant 16 : index
    %16 = memref.load %arg1[%c16] : memref<81xf32, #tpu.memory_space<smem>>
    %c17 = arith.constant 17 : index
    %17 = memref.load %arg1[%c17] : memref<81xf32, #tpu.memory_space<smem>>
    %c18 = arith.constant 18 : index
    %18 = memref.load %arg1[%c18] : memref<81xf32, #tpu.memory_space<smem>>
    %c19 = arith.constant 19 : index
    %19 = memref.load %arg1[%c19] : memref<81xf32, #tpu.memory_space<smem>>
    %c20 = arith.constant 20 : index
    %20 = memref.load %arg1[%c20] : memref<81xf32, #tpu.memory_space<smem>>
    %c21 = arith.constant 21 : index
    %21 = memref.load %arg1[%c21] : memref<81xf32, #tpu.memory_space<smem>>
    %c22 = arith.constant 22 : index
    %22 = memref.load %arg1[%c22] : memref<81xf32, #tpu.memory_space<smem>>
    %c23 = arith.constant 23 : index
    %23 = memref.load %arg1[%c23] : memref<81xf32, #tpu.memory_space<smem>>
    %c24 = arith.constant 24 : index
    %24 = memref.load %arg1[%c24] : memref<81xf32, #tpu.memory_space<smem>>
    %c25 = arith.constant 25 : index
    %25 = memref.load %arg1[%c25] : memref<81xf32, #tpu.memory_space<smem>>
    %c26 = arith.constant 26 : index
    %26 = memref.load %arg1[%c26] : memref<81xf32, #tpu.memory_space<smem>>
    %c27 = arith.constant 27 : index
    %27 = memref.load %arg1[%c27] : memref<81xf32, #tpu.memory_space<smem>>
    %c28 = arith.constant 28 : index
    %28 = memref.load %arg1[%c28] : memref<81xf32, #tpu.memory_space<smem>>
    %c29 = arith.constant 29 : index
    %29 = memref.load %arg1[%c29] : memref<81xf32, #tpu.memory_space<smem>>
    %c30 = arith.constant 30 : index
    %30 = memref.load %arg1[%c30] : memref<81xf32, #tpu.memory_space<smem>>
    %c31 = arith.constant 31 : index
    %31 = memref.load %arg1[%c31] : memref<81xf32, #tpu.memory_space<smem>>
    %c32 = arith.constant 32 : index
    %32 = memref.load %arg1[%c32] : memref<81xf32, #tpu.memory_space<smem>>
    %c33 = arith.constant 33 : index
    %33 = memref.load %arg1[%c33] : memref<81xf32, #tpu.memory_space<smem>>
    %c34 = arith.constant 34 : index
    %34 = memref.load %arg1[%c34] : memref<81xf32, #tpu.memory_space<smem>>
    %c35 = arith.constant 35 : index
    %35 = memref.load %arg1[%c35] : memref<81xf32, #tpu.memory_space<smem>>
    %c36 = arith.constant 36 : index
    %36 = memref.load %arg1[%c36] : memref<81xf32, #tpu.memory_space<smem>>
    %c37 = arith.constant 37 : index
    %37 = memref.load %arg1[%c37] : memref<81xf32, #tpu.memory_space<smem>>
    %c38 = arith.constant 38 : index
    %38 = memref.load %arg1[%c38] : memref<81xf32, #tpu.memory_space<smem>>
    %c39 = arith.constant 39 : index
    %39 = memref.load %arg1[%c39] : memref<81xf32, #tpu.memory_space<smem>>
    %c40 = arith.constant 40 : index
    %40 = memref.load %arg1[%c40] : memref<81xf32, #tpu.memory_space<smem>>
    %c41 = arith.constant 41 : index
    %41 = memref.load %arg1[%c41] : memref<81xf32, #tpu.memory_space<smem>>
    %c42 = arith.constant 42 : index
    %42 = memref.load %arg1[%c42] : memref<81xf32, #tpu.memory_space<smem>>
    %c43 = arith.constant 43 : index
    %43 = memref.load %arg1[%c43] : memref<81xf32, #tpu.memory_space<smem>>
    %c44 = arith.constant 44 : index
    %44 = memref.load %arg1[%c44] : memref<81xf32, #tpu.memory_space<smem>>
    %c45 = arith.constant 45 : index
    %45 = memref.load %arg1[%c45] : memref<81xf32, #tpu.memory_space<smem>>
    %c46 = arith.constant 46 : index
    %46 = memref.load %arg1[%c46] : memref<81xf32, #tpu.memory_space<smem>>
    %c47 = arith.constant 47 : index
    %47 = memref.load %arg1[%c47] : memref<81xf32, #tpu.memory_space<smem>>
    %c48 = arith.constant 48 : index
    %48 = memref.load %arg1[%c48] : memref<81xf32, #tpu.memory_space<smem>>
    %c49 = arith.constant 49 : index
    %49 = memref.load %arg1[%c49] : memref<81xf32, #tpu.memory_space<smem>>
    %c50 = arith.constant 50 : index
    %50 = memref.load %arg1[%c50] : memref<81xf32, #tpu.memory_space<smem>>
    %c51 = arith.constant 51 : index
    %51 = memref.load %arg1[%c51] : memref<81xf32, #tpu.memory_space<smem>>
    %c52 = arith.constant 52 : index
    %52 = memref.load %arg1[%c52] : memref<81xf32, #tpu.memory_space<smem>>
    %c53 = arith.constant 53 : index
    %53 = memref.load %arg1[%c53] : memref<81xf32, #tpu.memory_space<smem>>
    %c54 = arith.constant 54 : index
    %54 = memref.load %arg1[%c54] : memref<81xf32, #tpu.memory_space<smem>>
    %c55 = arith.constant 55 : index
    %55 = memref.load %arg1[%c55] : memref<81xf32, #tpu.memory_space<smem>>
    %c56 = arith.constant 56 : index
    %56 = memref.load %arg1[%c56] : memref<81xf32, #tpu.memory_space<smem>>
    %c57 = arith.constant 57 : index
    %57 = memref.load %arg1[%c57] : memref<81xf32, #tpu.memory_space<smem>>
    %c58 = arith.constant 58 : index
    %58 = memref.load %arg1[%c58] : memref<81xf32, #tpu.memory_space<smem>>
    %c59 = arith.constant 59 : index
    %59 = memref.load %arg1[%c59] : memref<81xf32, #tpu.memory_space<smem>>
    %c60 = arith.constant 60 : index
    %60 = memref.load %arg1[%c60] : memref<81xf32, #tpu.memory_space<smem>>
    %c61 = arith.constant 61 : index
    %61 = memref.load %arg1[%c61] : memref<81xf32, #tpu.memory_space<smem>>
    %c62 = arith.constant 62 : index
    %62 = memref.load %arg1[%c62] : memref<81xf32, #tpu.memory_space<smem>>
    %c63 = arith.constant 63 : index
    %63 = memref.load %arg1[%c63] : memref<81xf32, #tpu.memory_space<smem>>
    %c64 = arith.constant 64 : index
    %64 = memref.load %arg1[%c64] : memref<81xf32, #tpu.memory_space<smem>>
    %c65 = arith.constant 65 : index
    %65 = memref.load %arg1[%c65] : memref<81xf32, #tpu.memory_space<smem>>
    %c66 = arith.constant 66 : index
    %66 = memref.load %arg1[%c66] : memref<81xf32, #tpu.memory_space<smem>>
    %c67 = arith.constant 67 : index
    %67 = memref.load %arg1[%c67] : memref<81xf32, #tpu.memory_space<smem>>
    %c68 = arith.constant 68 : index
    %68 = memref.load %arg1[%c68] : memref<81xf32, #tpu.memory_space<smem>>
    %c69 = arith.constant 69 : index
    %69 = memref.load %arg1[%c69] : memref<81xf32, #tpu.memory_space<smem>>
    %c70 = arith.constant 70 : index
    %70 = memref.load %arg1[%c70] : memref<81xf32, #tpu.memory_space<smem>>
    %c71 = arith.constant 71 : index
    %71 = memref.load %arg1[%c71] : memref<81xf32, #tpu.memory_space<smem>>
    %c72 = arith.constant 72 : index
    %72 = memref.load %arg1[%c72] : memref<81xf32, #tpu.memory_space<smem>>
    %c73 = arith.constant 73 : index
    %73 = memref.load %arg1[%c73] : memref<81xf32, #tpu.memory_space<smem>>
    %c74 = arith.constant 74 : index
    %74 = memref.load %arg1[%c74] : memref<81xf32, #tpu.memory_space<smem>>
    %c75 = arith.constant 75 : index
    %75 = memref.load %arg1[%c75] : memref<81xf32, #tpu.memory_space<smem>>
    %c76 = arith.constant 76 : index
    %76 = memref.load %arg1[%c76] : memref<81xf32, #tpu.memory_space<smem>>
    %c77 = arith.constant 77 : index
    %77 = memref.load %arg1[%c77] : memref<81xf32, #tpu.memory_space<smem>>
    %c78 = arith.constant 78 : index
    %78 = memref.load %arg1[%c78] : memref<81xf32, #tpu.memory_space<smem>>
    %c79 = arith.constant 79 : index
    %79 = memref.load %arg1[%c79] : memref<81xf32, #tpu.memory_space<smem>>
    %c80 = arith.constant 80 : index
    %80 = memref.load %arg1[%c80] : memref<81xf32, #tpu.memory_space<smem>>
    %c0_0 = arith.constant 0 : index
    %81 = memref.load %arg2[%c0_0] : memref<3xf32, #tpu.memory_space<smem>>
    %c1_1 = arith.constant 1 : index
    %82 = memref.load %arg2[%c1_1] : memref<3xf32, #tpu.memory_space<smem>>
    %c2_2 = arith.constant 2 : index
    %83 = memref.load %arg2[%c2_2] : memref<3xf32, #tpu.memory_space<smem>>
    %c0_3 = arith.constant 0 : index
    %c0_4 = arith.constant 0 : index
    %c0_5 = arith.constant 0 : index
    %c0_6 = arith.constant 0 : index
    %84 = vector.load %arg3[%c0_3, %c0_4, %c0_5, %c0_6] : memref<1x3x16x128xf32, #tpu.memory_space<vmem>>, vector<1x1x16x128xf32>
    %85 = vector.shape_cast %84 : vector<1x1x16x128xf32> to vector<16x128xf32>
    %86 = vector.extract_strided_slice %85 {offsets = [0, 0], sizes = [14, 128], strides = [1, 1]} : vector<16x128xf32> to vector<14x128xf32>
    %87 = vector.broadcast %0 : f32 to vector<14x128xf32>
    %88 = arith.mulf %86, %87 : vector<14x128xf32>
    %89 = vector.broadcast %27 : f32 to vector<14x128xf32>
    %90 = arith.mulf %86, %89 : vector<14x128xf32>
    %91 = vector.broadcast %54 : f32 to vector<14x128xf32>
    %92 = arith.mulf %86, %91 : vector<14x128xf32>
    %93 = vector.extract_strided_slice %85 {offsets = [1, 0], sizes = [14, 128], strides = [1, 1]} : vector<16x128xf32> to vector<14x128xf32>
    %94 = vector.broadcast %3 : f32 to vector<14x128xf32>
    %95 = arith.mulf %93, %94 : vector<14x128xf32>
    %96 = arith.addf %88, %95 : vector<14x128xf32>
    %97 = vector.broadcast %30 : f32 to vector<14x128xf32>
    %98 = arith.mulf %93, %97 : vector<14x128xf32>
    %99 = arith.addf %90, %98 : vector<14x128xf32>
    %100 = vector.broadcast %57 : f32 to vector<14x128xf32>
    %101 = arith.mulf %93, %100 : vector<14x128xf32>
    %102 = arith.addf %92, %101 : vector<14x128xf32>
    %103 = vector.extract_strided_slice %85 {offsets = [2, 0], sizes = [14, 128], strides = [1, 1]} : vector<16x128xf32> to vector<14x128xf32>
    %104 = vector.broadcast %6 : f32 to vector<14x128xf32>
    %105 = arith.mulf %103, %104 : vector<14x128xf32>
    %106 = arith.addf %96, %105 : vector<14x128xf32>
    %107 = vector.broadcast %33 : f32 to vector<14x128xf32>
    %108 = arith.mulf %103, %107 : vector<14x128xf32>
    %109 = arith.addf %99, %108 : vector<14x128xf32>
    %110 = vector.broadcast %60 : f32 to vector<14x128xf32>
    %111 = arith.mulf %103, %110 : vector<14x128xf32>
    %112 = arith.addf %102, %111 : vector<14x128xf32>
    %c127_i32 = arith.constant 127 : i32
    %113 = tpu.dynamic_rotate %85 by %c127_i32 dim 1 : vector<16x128xf32>, i32 -> vector<16x128xf32>
    %114 = vector.extract_strided_slice %113 {offsets = [0, 0], sizes = [14, 128], strides = [1, 1]} : vector<16x128xf32> to vector<14x128xf32>
    %115 = vector.broadcast %1 : f32 to vector<14x128xf32>
    %116 = arith.mulf %114, %115 : vector<14x128xf32>
    %117 = arith.addf %106, %116 : vector<14x128xf32>
    %118 = vector.broadcast %28 : f32 to vector<14x128xf32>
    %119 = arith.mulf %114, %118 : vector<14x128xf32>
    %120 = arith.addf %109, %119 : vector<14x128xf32>
    %121 = vector.broadcast %55 : f32 to vector<14x128xf32>
    %122 = arith.mulf %114, %121 : vector<14x128xf32>
    %123 = arith.addf %112, %122 : vector<14x128xf32>
    %124 = vector.extract_strided_slice %113 {offsets = [1, 0], sizes = [14, 128], strides = [1, 1]} : vector<16x128xf32> to vector<14x128xf32>
    %125 = vector.broadcast %4 : f32 to vector<14x128xf32>
    %126 = arith.mulf %124, %125 : vector<14x128xf32>
    %127 = arith.addf %117, %126 : vector<14x128xf32>
    %128 = vector.broadcast %31 : f32 to vector<14x128xf32>
    %129 = arith.mulf %124, %128 : vector<14x128xf32>
    %130 = arith.addf %120, %129 : vector<14x128xf32>
    %131 = vector.broadcast %58 : f32 to vector<14x128xf32>
    %132 = arith.mulf %124, %131 : vector<14x128xf32>
    %133 = arith.addf %123, %132 : vector<14x128xf32>
    %134 = vector.extract_strided_slice %113 {offsets = [2, 0], sizes = [14, 128], strides = [1, 1]} : vector<16x128xf32> to vector<14x128xf32>
    %135 = vector.broadcast %7 : f32 to vector<14x128xf32>
    %136 = arith.mulf %134, %135 : vector<14x128xf32>
    %137 = arith.addf %127, %136 : vector<14x128xf32>
    %138 = vector.broadcast %34 : f32 to vector<14x128xf32>
    %139 = arith.mulf %134, %138 : vector<14x128xf32>
    %140 = arith.addf %130, %139 : vector<14x128xf32>
    %141 = vector.broadcast %61 : f32 to vector<14x128xf32>
    %142 = arith.mulf %134, %141 : vector<14x128xf32>
    %143 = arith.addf %133, %142 : vector<14x128xf32>
    %c126_i32 = arith.constant 126 : i32
    %144 = tpu.dynamic_rotate %85 by %c126_i32 dim 1 : vector<16x128xf32>, i32 -> vector<16x128xf32>
    %145 = vector.extract_strided_slice %144 {offsets = [0, 0], sizes = [14, 128], strides = [1, 1]} : vector<16x128xf32> to vector<14x128xf32>
    %146 = vector.broadcast %2 : f32 to vector<14x128xf32>
    %147 = arith.mulf %145, %146 : vector<14x128xf32>
    %148 = arith.addf %137, %147 : vector<14x128xf32>
    %149 = vector.broadcast %29 : f32 to vector<14x128xf32>
    %150 = arith.mulf %145, %149 : vector<14x128xf32>
    %151 = arith.addf %140, %150 : vector<14x128xf32>
    %152 = vector.broadcast %56 : f32 to vector<14x128xf32>
    %153 = arith.mulf %145, %152 : vector<14x128xf32>
    %154 = arith.addf %143, %153 : vector<14x128xf32>
    %155 = vector.extract_strided_slice %144 {offsets = [1, 0], sizes = [14, 128], strides = [1, 1]} : vector<16x128xf32> to vector<14x128xf32>
    %156 = vector.broadcast %5 : f32 to vector<14x128xf32>
    %157 = arith.mulf %155, %156 : vector<14x128xf32>
    %158 = arith.addf %148, %157 : vector<14x128xf32>
    %159 = vector.broadcast %32 : f32 to vector<14x128xf32>
    %160 = arith.mulf %155, %159 : vector<14x128xf32>
    %161 = arith.addf %151, %160 : vector<14x128xf32>
    %162 = vector.broadcast %59 : f32 to vector<14x128xf32>
    %163 = arith.mulf %155, %162 : vector<14x128xf32>
    %164 = arith.addf %154, %163 : vector<14x128xf32>
    %165 = vector.extract_strided_slice %144 {offsets = [2, 0], sizes = [14, 128], strides = [1, 1]} : vector<16x128xf32> to vector<14x128xf32>
    %166 = vector.broadcast %8 : f32 to vector<14x128xf32>
    %167 = arith.mulf %165, %166 : vector<14x128xf32>
    %168 = arith.addf %158, %167 : vector<14x128xf32>
    %169 = vector.broadcast %35 : f32 to vector<14x128xf32>
    %170 = arith.mulf %165, %169 : vector<14x128xf32>
    %171 = arith.addf %161, %170 : vector<14x128xf32>
    %172 = vector.broadcast %62 : f32 to vector<14x128xf32>
    %173 = arith.mulf %165, %172 : vector<14x128xf32>
    %174 = arith.addf %164, %173 : vector<14x128xf32>
    %c0_7 = arith.constant 0 : index
    %c1_8 = arith.constant 1 : index
    %c0_9 = arith.constant 0 : index
    %c0_10 = arith.constant 0 : index
    %175 = vector.load %arg3[%c0_7, %c1_8, %c0_9, %c0_10] : memref<1x3x16x128xf32, #tpu.memory_space<vmem>>, vector<1x1x16x128xf32>
    %176 = vector.shape_cast %175 : vector<1x1x16x128xf32> to vector<16x128xf32>
    %177 = vector.extract_strided_slice %176 {offsets = [0, 0], sizes = [14, 128], strides = [1, 1]} : vector<16x128xf32> to vector<14x128xf32>
    %178 = vector.broadcast %9 : f32 to vector<14x128xf32>
    %179 = arith.mulf %177, %178 : vector<14x128xf32>
    %180 = arith.addf %168, %179 : vector<14x128xf32>
    %181 = vector.broadcast %36 : f32 to vector<14x128xf32>
    %182 = arith.mulf %177, %181 : vector<14x128xf32>
    %183 = arith.addf %171, %182 : vector<14x128xf32>
    %184 = vector.broadcast %63 : f32 to vector<14x128xf32>
    %185 = arith.mulf %177, %184 : vector<14x128xf32>
    %186 = arith.addf %174, %185 : vector<14x128xf32>
    %187 = vector.extract_strided_slice %176 {offsets = [1, 0], sizes = [14, 128], strides = [1, 1]} : vector<16x128xf32> to vector<14x128xf32>
    %188 = vector.broadcast %12 : f32 to vector<14x128xf32>
    %189 = arith.mulf %187, %188 : vector<14x128xf32>
    %190 = arith.addf %180, %189 : vector<14x128xf32>
    %191 = vector.broadcast %39 : f32 to vector<14x128xf32>
    %192 = arith.mulf %187, %191 : vector<14x128xf32>
    %193 = arith.addf %183, %192 : vector<14x128xf32>
    %194 = vector.broadcast %66 : f32 to vector<14x128xf32>
    %195 = arith.mulf %187, %194 : vector<14x128xf32>
    %196 = arith.addf %186, %195 : vector<14x128xf32>
    %197 = vector.extract_strided_slice %176 {offsets = [2, 0], sizes = [14, 128], strides = [1, 1]} : vector<16x128xf32> to vector<14x128xf32>
    %198 = vector.broadcast %15 : f32 to vector<14x128xf32>
    %199 = arith.mulf %197, %198 : vector<14x128xf32>
    %200 = arith.addf %190, %199 : vector<14x128xf32>
    %201 = vector.broadcast %42 : f32 to vector<14x128xf32>
    %202 = arith.mulf %197, %201 : vector<14x128xf32>
    %203 = arith.addf %193, %202 : vector<14x128xf32>
    %204 = vector.broadcast %69 : f32 to vector<14x128xf32>
    %205 = arith.mulf %197, %204 : vector<14x128xf32>
    %206 = arith.addf %196, %205 : vector<14x128xf32>
    %c127_i32_11 = arith.constant 127 : i32
    %207 = tpu.dynamic_rotate %176 by %c127_i32_11 dim 1 : vector<16x128xf32>, i32 -> vector<16x128xf32>
    %208 = vector.extract_strided_slice %207 {offsets = [0, 0], sizes = [14, 128], strides = [1, 1]} : vector<16x128xf32> to vector<14x128xf32>
    %209 = vector.broadcast %10 : f32 to vector<14x128xf32>
    %210 = arith.mulf %208, %209 : vector<14x128xf32>
    %211 = arith.addf %200, %210 : vector<14x128xf32>
    %212 = vector.broadcast %37 : f32 to vector<14x128xf32>
    %213 = arith.mulf %208, %212 : vector<14x128xf32>
    %214 = arith.addf %203, %213 : vector<14x128xf32>
    %215 = vector.broadcast %64 : f32 to vector<14x128xf32>
    %216 = arith.mulf %208, %215 : vector<14x128xf32>
    %217 = arith.addf %206, %216 : vector<14x128xf32>
    %218 = vector.extract_strided_slice %207 {offsets = [1, 0], sizes = [14, 128], strides = [1, 1]} : vector<16x128xf32> to vector<14x128xf32>
    %219 = vector.broadcast %13 : f32 to vector<14x128xf32>
    %220 = arith.mulf %218, %219 : vector<14x128xf32>
    %221 = arith.addf %211, %220 : vector<14x128xf32>
    %222 = vector.broadcast %40 : f32 to vector<14x128xf32>
    %223 = arith.mulf %218, %222 : vector<14x128xf32>
    %224 = arith.addf %214, %223 : vector<14x128xf32>
    %225 = vector.broadcast %67 : f32 to vector<14x128xf32>
    %226 = arith.mulf %218, %225 : vector<14x128xf32>
    %227 = arith.addf %217, %226 : vector<14x128xf32>
    %228 = vector.extract_strided_slice %207 {offsets = [2, 0], sizes = [14, 128], strides = [1, 1]} : vector<16x128xf32> to vector<14x128xf32>
    %229 = vector.broadcast %16 : f32 to vector<14x128xf32>
    %230 = arith.mulf %228, %229 : vector<14x128xf32>
    %231 = arith.addf %221, %230 : vector<14x128xf32>
    %232 = vector.broadcast %43 : f32 to vector<14x128xf32>
    %233 = arith.mulf %228, %232 : vector<14x128xf32>
    %234 = arith.addf %224, %233 : vector<14x128xf32>
    %235 = vector.broadcast %70 : f32 to vector<14x128xf32>
    %236 = arith.mulf %228, %235 : vector<14x128xf32>
    %237 = arith.addf %227, %236 : vector<14x128xf32>
    %c126_i32_12 = arith.constant 126 : i32
    %238 = tpu.dynamic_rotate %176 by %c126_i32_12 dim 1 : vector<16x128xf32>, i32 -> vector<16x128xf32>
    %239 = vector.extract_strided_slice %238 {offsets = [0, 0], sizes = [14, 128], strides = [1, 1]} : vector<16x128xf32> to vector<14x128xf32>
    %240 = vector.broadcast %11 : f32 to vector<14x128xf32>
    %241 = arith.mulf %239, %240 : vector<14x128xf32>
    %242 = arith.addf %231, %241 : vector<14x128xf32>
    %243 = vector.broadcast %38 : f32 to vector<14x128xf32>
    %244 = arith.mulf %239, %243 : vector<14x128xf32>
    %245 = arith.addf %234, %244 : vector<14x128xf32>
    %246 = vector.broadcast %65 : f32 to vector<14x128xf32>
    %247 = arith.mulf %239, %246 : vector<14x128xf32>
    %248 = arith.addf %237, %247 : vector<14x128xf32>
    %249 = vector.extract_strided_slice %238 {offsets = [1, 0], sizes = [14, 128], strides = [1, 1]} : vector<16x128xf32> to vector<14x128xf32>
    %250 = vector.broadcast %14 : f32 to vector<14x128xf32>
    %251 = arith.mulf %249, %250 : vector<14x128xf32>
    %252 = arith.addf %242, %251 : vector<14x128xf32>
    %253 = vector.broadcast %41 : f32 to vector<14x128xf32>
    %254 = arith.mulf %249, %253 : vector<14x128xf32>
    %255 = arith.addf %245, %254 : vector<14x128xf32>
    %256 = vector.broadcast %68 : f32 to vector<14x128xf32>
    %257 = arith.mulf %249, %256 : vector<14x128xf32>
    %258 = arith.addf %248, %257 : vector<14x128xf32>
    %259 = vector.extract_strided_slice %238 {offsets = [2, 0], sizes = [14, 128], strides = [1, 1]} : vector<16x128xf32> to vector<14x128xf32>
    %260 = vector.broadcast %17 : f32 to vector<14x128xf32>
    %261 = arith.mulf %259, %260 : vector<14x128xf32>
    %262 = arith.addf %252, %261 : vector<14x128xf32>
    %263 = vector.broadcast %44 : f32 to vector<14x128xf32>
    %264 = arith.mulf %259, %263 : vector<14x128xf32>
    %265 = arith.addf %255, %264 : vector<14x128xf32>
    %266 = vector.broadcast %71 : f32 to vector<14x128xf32>
    %267 = arith.mulf %259, %266 : vector<14x128xf32>
    %268 = arith.addf %258, %267 : vector<14x128xf32>
    %c0_13 = arith.constant 0 : index
    %c2_14 = arith.constant 2 : index
    %c0_15 = arith.constant 0 : index
    %c0_16 = arith.constant 0 : index
    %269 = vector.load %arg3[%c0_13, %c2_14, %c0_15, %c0_16] : memref<1x3x16x128xf32, #tpu.memory_space<vmem>>, vector<1x1x16x128xf32>
    %270 = vector.shape_cast %269 : vector<1x1x16x128xf32> to vector<16x128xf32>
    %271 = vector.extract_strided_slice %270 {offsets = [0, 0], sizes = [14, 128], strides = [1, 1]} : vector<16x128xf32> to vector<14x128xf32>
    %272 = vector.broadcast %18 : f32 to vector<14x128xf32>
    %273 = arith.mulf %271, %272 : vector<14x128xf32>
    %274 = arith.addf %262, %273 : vector<14x128xf32>
    %275 = vector.broadcast %45 : f32 to vector<14x128xf32>
    %276 = arith.mulf %271, %275 : vector<14x128xf32>
    %277 = arith.addf %265, %276 : vector<14x128xf32>
    %278 = vector.broadcast %72 : f32 to vector<14x128xf32>
    %279 = arith.mulf %271, %278 : vector<14x128xf32>
    %280 = arith.addf %268, %279 : vector<14x128xf32>
    %281 = vector.extract_strided_slice %270 {offsets = [1, 0], sizes = [14, 128], strides = [1, 1]} : vector<16x128xf32> to vector<14x128xf32>
    %282 = vector.broadcast %21 : f32 to vector<14x128xf32>
    %283 = arith.mulf %281, %282 : vector<14x128xf32>
    %284 = arith.addf %274, %283 : vector<14x128xf32>
    %285 = vector.broadcast %48 : f32 to vector<14x128xf32>
    %286 = arith.mulf %281, %285 : vector<14x128xf32>
    %287 = arith.addf %277, %286 : vector<14x128xf32>
    %288 = vector.broadcast %75 : f32 to vector<14x128xf32>
    %289 = arith.mulf %281, %288 : vector<14x128xf32>
    %290 = arith.addf %280, %289 : vector<14x128xf32>
    %291 = vector.extract_strided_slice %270 {offsets = [2, 0], sizes = [14, 128], strides = [1, 1]} : vector<16x128xf32> to vector<14x128xf32>
    %292 = vector.broadcast %24 : f32 to vector<14x128xf32>
    %293 = arith.mulf %291, %292 : vector<14x128xf32>
    %294 = arith.addf %284, %293 : vector<14x128xf32>
    %295 = vector.broadcast %51 : f32 to vector<14x128xf32>
    %296 = arith.mulf %291, %295 : vector<14x128xf32>
    %297 = arith.addf %287, %296 : vector<14x128xf32>
    %298 = vector.broadcast %78 : f32 to vector<14x128xf32>
    %299 = arith.mulf %291, %298 : vector<14x128xf32>
    %300 = arith.addf %290, %299 : vector<14x128xf32>
    %c127_i32_17 = arith.constant 127 : i32
    %301 = tpu.dynamic_rotate %270 by %c127_i32_17 dim 1 : vector<16x128xf32>, i32 -> vector<16x128xf32>
    %302 = vector.extract_strided_slice %301 {offsets = [0, 0], sizes = [14, 128], strides = [1, 1]} : vector<16x128xf32> to vector<14x128xf32>
    %303 = vector.broadcast %19 : f32 to vector<14x128xf32>
    %304 = arith.mulf %302, %303 : vector<14x128xf32>
    %305 = arith.addf %294, %304 : vector<14x128xf32>
    %306 = vector.broadcast %46 : f32 to vector<14x128xf32>
    %307 = arith.mulf %302, %306 : vector<14x128xf32>
    %308 = arith.addf %297, %307 : vector<14x128xf32>
    %309 = vector.broadcast %73 : f32 to vector<14x128xf32>
    %310 = arith.mulf %302, %309 : vector<14x128xf32>
    %311 = arith.addf %300, %310 : vector<14x128xf32>
    %312 = vector.extract_strided_slice %301 {offsets = [1, 0], sizes = [14, 128], strides = [1, 1]} : vector<16x128xf32> to vector<14x128xf32>
    %313 = vector.broadcast %22 : f32 to vector<14x128xf32>
    %314 = arith.mulf %312, %313 : vector<14x128xf32>
    %315 = arith.addf %305, %314 : vector<14x128xf32>
    %316 = vector.broadcast %49 : f32 to vector<14x128xf32>
    %317 = arith.mulf %312, %316 : vector<14x128xf32>
    %318 = arith.addf %308, %317 : vector<14x128xf32>
    %319 = vector.broadcast %76 : f32 to vector<14x128xf32>
    %320 = arith.mulf %312, %319 : vector<14x128xf32>
    %321 = arith.addf %311, %320 : vector<14x128xf32>
    %322 = vector.extract_strided_slice %301 {offsets = [2, 0], sizes = [14, 128], strides = [1, 1]} : vector<16x128xf32> to vector<14x128xf32>
    %323 = vector.broadcast %25 : f32 to vector<14x128xf32>
    %324 = arith.mulf %322, %323 : vector<14x128xf32>
    %325 = arith.addf %315, %324 : vector<14x128xf32>
    %326 = vector.broadcast %52 : f32 to vector<14x128xf32>
    %327 = arith.mulf %322, %326 : vector<14x128xf32>
    %328 = arith.addf %318, %327 : vector<14x128xf32>
    %329 = vector.broadcast %79 : f32 to vector<14x128xf32>
    %330 = arith.mulf %322, %329 : vector<14x128xf32>
    %331 = arith.addf %321, %330 : vector<14x128xf32>
    %c126_i32_18 = arith.constant 126 : i32
    %332 = tpu.dynamic_rotate %270 by %c126_i32_18 dim 1 : vector<16x128xf32>, i32 -> vector<16x128xf32>
    %333 = vector.extract_strided_slice %332 {offsets = [0, 0], sizes = [14, 128], strides = [1, 1]} : vector<16x128xf32> to vector<14x128xf32>
    %334 = vector.broadcast %20 : f32 to vector<14x128xf32>
    %335 = arith.mulf %333, %334 : vector<14x128xf32>
    %336 = arith.addf %325, %335 : vector<14x128xf32>
    %337 = vector.broadcast %47 : f32 to vector<14x128xf32>
    %338 = arith.mulf %333, %337 : vector<14x128xf32>
    %339 = arith.addf %328, %338 : vector<14x128xf32>
    %340 = vector.broadcast %74 : f32 to vector<14x128xf32>
    %341 = arith.mulf %333, %340 : vector<14x128xf32>
    %342 = arith.addf %331, %341 : vector<14x128xf32>
    %343 = vector.extract_strided_slice %332 {offsets = [1, 0], sizes = [14, 128], strides = [1, 1]} : vector<16x128xf32> to vector<14x128xf32>
    %344 = vector.broadcast %23 : f32 to vector<14x128xf32>
    %345 = arith.mulf %343, %344 : vector<14x128xf32>
    %346 = arith.addf %336, %345 : vector<14x128xf32>
    %347 = vector.broadcast %50 : f32 to vector<14x128xf32>
    %348 = arith.mulf %343, %347 : vector<14x128xf32>
    %349 = arith.addf %339, %348 : vector<14x128xf32>
    %350 = vector.broadcast %77 : f32 to vector<14x128xf32>
    %351 = arith.mulf %343, %350 : vector<14x128xf32>
    %352 = arith.addf %342, %351 : vector<14x128xf32>
    %353 = vector.extract_strided_slice %332 {offsets = [2, 0], sizes = [14, 128], strides = [1, 1]} : vector<16x128xf32> to vector<14x128xf32>
    %354 = vector.broadcast %26 : f32 to vector<14x128xf32>
    %355 = arith.mulf %353, %354 : vector<14x128xf32>
    %356 = arith.addf %346, %355 : vector<14x128xf32>
    %357 = vector.broadcast %53 : f32 to vector<14x128xf32>
    %358 = arith.mulf %353, %357 : vector<14x128xf32>
    %359 = arith.addf %349, %358 : vector<14x128xf32>
    %360 = vector.broadcast %80 : f32 to vector<14x128xf32>
    %361 = arith.mulf %353, %360 : vector<14x128xf32>
    %362 = arith.addf %352, %361 : vector<14x128xf32>
    %363 = vector.broadcast %81 : f32 to vector<14x128xf32>
    %364 = arith.addf %356, %363 : vector<14x128xf32>
    %c0_19 = arith.constant 0 : index
    %c0_20 = arith.constant 0 : index
    %c0_21 = arith.constant 0 : index
    %c0_22 = arith.constant 0 : index
    %365 = vector.load %arg4[%c0_19, %c0_20, %c0_21, %c0_22] : memref<1x3x14x128xf32, #tpu.memory_space<vmem>>, vector<1x1x14x128xf32>
    %366 = vector.shape_cast %365 : vector<1x1x14x128xf32> to vector<14x128xf32>
    %367 = vector.shape_cast %364 : vector<14x128xf32> to vector<1x1x14x128xf32>
    tpu.vector_store %arg4[%c0_19, %c0_20, %c0_21, %c0_22], %367 {strides = array<i32>} : memref<1x3x14x128xf32, #tpu.memory_space<vmem>>, vector<1x1x14x128xf32>,
    %368 = vector.broadcast %82 : f32 to vector<14x128xf32>
    %369 = arith.addf %359, %368 : vector<14x128xf32>
    %c0_23 = arith.constant 0 : index
    %c1_24 = arith.constant 1 : index
    %c0_25 = arith.constant 0 : index
    %c0_26 = arith.constant 0 : index
    %370 = vector.load %arg4[%c0_23, %c1_24, %c0_25, %c0_26] : memref<1x3x14x128xf32, #tpu.memory_space<vmem>>, vector<1x1x14x128xf32>
    %371 = vector.shape_cast %370 : vector<1x1x14x128xf32> to vector<14x128xf32>
    %372 = vector.shape_cast %369 : vector<14x128xf32> to vector<1x1x14x128xf32>
    tpu.vector_store %arg4[%c0_23, %c1_24, %c0_25, %c0_26], %372 {strides = array<i32>} : memref<1x3x14x128xf32, #tpu.memory_space<vmem>>, vector<1x1x14x128xf32>,
    %373 = vector.broadcast %83 : f32 to vector<14x128xf32>
    %374 = arith.addf %362, %373 : vector<14x128xf32>
    %c0_27 = arith.constant 0 : index
    %c2_28 = arith.constant 2 : index
    %c0_29 = arith.constant 0 : index
    %c0_30 = arith.constant 0 : index
    %375 = vector.load %arg4[%c0_27, %c2_28, %c0_29, %c0_30] : memref<1x3x14x128xf32, #tpu.memory_space<vmem>>, vector<1x1x14x128xf32>
    %376 = vector.shape_cast %375 : vector<1x1x14x128xf32> to vector<14x128xf32>
    %377 = vector.shape_cast %374 : vector<14x128xf32> to vector<1x1x14x128xf32>
    tpu.vector_store %arg4[%c0_27, %c2_28, %c0_29, %c0_30], %377 {strides = array<i32>} : memref<1x3x14x128xf32, #tpu.memory_space<vmem>>, vector<1x1x14x128xf32>,
    return
  }
  func.func @transform_0(%arg0: i32) -> i32 {
    %c0_i32 = arith.constant 0 : i32
    %c0_i32_0 = arith.constant 0 : i32
    return %c0_i32 : i32
  }
  func.func @transform_1(%arg0: i32) -> i32 {
    %c0_i32 = arith.constant 0 : i32
    %c0_i32_0 = arith.constant 0 : i32
    return %c0_i32 : i32
  }
  func.func @transform_2(%arg0: i32) -> (i32, i32, i32, i32) {
    %c0_i32 = arith.constant 0 : i32
    %c0_i32_0 = arith.constant 0 : i32
    %c0_i32_1 = arith.constant 0 : i32
    %c0_i32_2 = arith.constant 0 : i32
    return %arg0, %c0_i32, %c0_i32_0, %c0_i32_1 : i32, i32, i32, i32
  }
  func.func @transform_3(%arg0: i32) -> (i32, i32, i32, i32) {
    %c0_i32 = arith.constant 0 : i32
    %c0_i32_0 = arith.constant 0 : i32
    %c0_i32_1 = arith.constant 0 : i32
    %c0_i32_2 = arith.constant 0 : i32
    return %arg0, %c0_i32, %c0_i32_0, %c0_i32_1 : i32, i32, i32, i32
  }
}

</mosaic_0001>

<bundles_post_ra>
// kernel: conv2d_pallas.1
= control target key start
LH: loop header
LB: loop body
LE: loop exit
PB: predicated region body
PF: predicated region fallthrough
CT: control target
= control target key end

     0   :  { %s2040_s0 = inlined_call_operand.vmem [shape: f32[81], index: 0, kind: input, shape index: {}]   ;;  %s2041_s1 = inlined_call_operand.vmem [shape: f32[3], index: 1, kind: input, shape index: {}]   ;;  %s2042_s2 = inlined_call_operand.vmem [shape: f32[1,3,16,128], index: 2, kind: input, shape index: {}]   ;;  %s2043_s3 = inlined_call_operand.vmem [shape: f32[1,3,14,128], index: 3, kind: output, shape index: {}]  }
   0x1   :  { %2151 = sst [smem:[#allocation72_spill]] %s2043_s3 }
   0x2   :  { %8 = vsyncpa [#allocation3], 0  ;;  %s16_s14 = sshll.u32 %s2040_s0, 4  ;;  %s17_s14 = int_to_ptr.vmem [resolvable:$true] %s16_s14 }
   0x3   :  { %9 = vsyncpa [#allocation5], 0  ;;  %s26_s17 = sshll.u32 %s2041_s1, 4  ;;  %s1051_s18 = scalar_lea.vmem %s17_s14, 16  ;;  %s27_s17 = int_to_ptr.vmem [resolvable:$true] %s26_s17 }
   0x4   :  { %p1052_p0 = scmp.ne.s32.totalorder %s17_s14, %s1051_s18  ;;  %p1056_p1 = scmp.lt.s32.totalorder %s17_s14, %s17_s14 }
   0x5   :  { %p1057_p2 = scmp.lt.s32.totalorder %s1051_s18, %s1051_s18 }
   0x7   :  { %p1058_p3 = por %p1057_p2, %p1056_p1 }
   0x9   :  { %p1059_p4 = pnand %p1058_p3, %p1052_p0 }
   0xb   :  { %1062 = shalt.err (!%p1059_p4)
}
   0xc   :  { %s1079_s19 = smov [#allocation2]   ;;  %s1063_s20 = scalar_lea.vmem %s27_s17, 16 }
   0xd   :  { %19 = dma.vmem_to_smem %s17_s14, 16, %s1079_s19, [#allocation3]  }
   0xe   :  { %p1064_p5 = scmp.ne.s32.totalorder %s27_s17, %s1063_s20  ;;  %p1068_p6 = scmp.lt.s32.totalorder %s27_s17, %s27_s17 }
   0xf   :  { %p1069_p7 = scmp.lt.s32.totalorder %s1063_s20, %s1063_s20 }
  0x11   :  { %p1070_p8 = por %p1069_p7, %p1068_p6 }
  0x13   :  { %p1071_p9 = pnand %p1070_p8, %p1064_p5 }
  0x15   :  { %1074 = shalt.err (!%p1071_p9)
}
  0x16   :  { %s1080_s0 = smov [#allocation4]  }
  0x17   :  { %29 = dma.vmem_to_smem %s27_s17, 16, %s1080_s0, [#allocation5]  }
  0x18   :  { %1075 = dma.done.wait [#allocation3], 16  }
  0x19   :  { %1076 = vsyncadd [#allocation3], 4294967280 }
  0x1a   :  { %1077 = dma.done.wait [#allocation5], 16  }
  0x1b   :  { %1078 = vsyncadd [#allocation5], 4294967280 }
  0x1c   :  { %38 = sfence }
  0x1d   :  { %v1112_v0 = vld [vmem:[%s2042_s2] sm:$0xff]  ;;  %s1081_s22 = smov 127   ;;  %s1082_s23 = smov 126   ;;  %v1123_v1 = vld [vmem:[%s2042_s2 + $0x8] sm:$0xff]  ;;  %v1134_v2 = vld [vmem:[%s2042_s2 + $0x18] sm:$0xff]  ;;  %vm139_vm0 = vcmask 1046528  }
  0x1e   :  { %208 = vrot.lane.b32.xlu0 %v1112_v0, %s1081_s22  ;;  %299 = vrot.lane.b32.xlu1 %v1112_v0, %s1082_s23  ;;  %s1118_s24 = sld [smem:[#allocation2]]  ;;  %s959_s27 = sld [smem:[#allocation2 + $0x3]]  ;;  %v1139_v3 = vld [vmem:[%s2042_s2 + $0x10] sm:$0xff]  ;;  %vm176_vm1 = vcmask 1045504   ;;  %v1187_v24 = vld [vmem:[%s2042_s2 + $0x28] sm:$0xff] }
  0x1f   :  { %s962_s28 = sld [smem:[#allocation2 + $0x6]]  ;;  %s1125_s29 = sld [smem:[#allocation2 + $0x1b]]  ;;  %v1192_v25 = vld [vmem:[%s2042_s2 + $0x20] sm:$0xff] }
  0x20   :  { %s986_s30 = sld [smem:[#allocation2 + $0x1e]]  ;;  %s1141_s8 = sld [smem:[#allocation2 + $0x21]] }
  0x21   :  { %s1143_s9 = sld [smem:[#allocation2 + $0x36]]  ;;  %s1146_s10 = sld [smem:[#allocation2 + $0x39]] }
  0x22   :  { %210 = vrot.lane.b32.xlu0 %v1123_v1, %s1081_s22  ;;  %301 = vrot.lane.b32.xlu1 %v1123_v1, %s1082_s23  ;;  %s1152_s11 = sld [smem:[#allocation2 + $0x3c]]  ;;  %s995_s16 = sld [smem:[#allocation2 + $0x27]] }
  0x23   :  { %s968_s2 = sld [smem:[#allocation2 + $0xc]]  ;;  %s1022_s17 = sld [smem:[#allocation2 + $0x42]] }
  0x24   :  { %v125_v4 = vstv %s1118_s24  ;;  %v134_v5 = vstv %s959_s27  ;;  %s971_s18 = sld [smem:[#allocation2 + $0xf]]  ;;  %s998_s19 = sld [smem:[#allocation2 + $0x2a]] }
  0x25   :  { %v135_v6 = vmul.f32 %v134_v5, %v1112_v0  ;;  %v1156_v7 = vmul.f32 %v134_v5, %v1123_v1  ;;  %v171_v8 = vstv %s962_s28  ;;  %v126_v9 = vmul.f32 %v125_v4, %v1112_v0  ;;  %s1025_s20 = sld [smem:[#allocation2 + $0x45]]  ;;  %s1004_s1 = sld [smem:[#allocation2 + $0x30]] }
  0x26   :  { %482 = vrot.lane.b32.xlu1 %v1134_v2, %s1081_s22  ;;  %480 = vrot.lane.b32.xlu0 %v1139_v3, %s1081_s22  ;;  %v128_v10 = vstv %s1125_s29  ;;  %v172_v11 = vmul.f32 %v171_v8, %v1112_v0  ;;  %v1164_v12 = vmul.f32 %v171_v8, %v1123_v1  ;;  %v147_v15 = vstv %s986_s30  ;;  %s977_s0 = sld [smem:[#allocation2 + $0x15]]  ;;  %s1031_s21 = sld [smem:[#allocation2 + $0x4b]] }
  0x27   :  { %v140_v13 = vrot.slane %v135_v6, 1  ;;  %v141_v14 = vrot.slane %v1156_v7, 1  ;;  %v148_v16 = vmul.f32 %v147_v15, %v1112_v0  ;;  %v1169_v17 = vmul.f32 %v147_v15, %v1123_v1  ;;  %s1034_s25 = sld [smem:[#allocation2 + $0x4e]]  ;;  %s1364_s26 = sld [smem:[#allocation2 + $0x1]] }
  0x28   :  { %v177_v18 = vrot.slane %v172_v11, 2  ;;  %v178_v19 = vrot.slane %v1164_v12, 2  ;;  %v129_v20 = vmul.f32 %v128_v10, %v1112_v0  ;;  %v131_v21 = vstv %s1143_s9  ;;  %s1366_s27 = sld [smem:[#allocation2 + $0x4]]  ;;  %s1368_s28 = sld [smem:[#allocation2 + $0x7]] }
  0x29   :  { %v142_v22 = vsel %vm139_vm0, %v140_v13, %v141_v14  ;;  %v184_v23 = vstv %s1141_s8  ;;  %v132_v26 = vmul.f32 %v131_v21, %v1112_v0  ;;  %v152_v28 = vrot.slane %v148_v16, 1  ;;  %s1370_s30 = sld [smem:[#allocation2 + $0x1c]]  ;;  %s1372_s4 = sld [smem:[#allocation2 + $0x1f]] }
  0x2a   :  { %573 = vrot.lane.b32.xlu1 %v1134_v2, %s1082_s23  ;;  %571 = vrot.lane.b32.xlu0 %v1139_v3, %s1082_s23  ;;  %v145_v27 = vadd.f32 %v142_v22, %v126_v9  ;;  %v153_v29 = vrot.slane %v1169_v17, 1  ;;  %v159_v30 = vstv %s1146_s10  ;;  %v179_v31 = vsel %vm176_vm1, %v177_v18, %v178_v19  ;;  %s1374_s5 = sld [smem:[#allocation2 + $0x22]]  ;;  %s1376_s6 = sld [smem:[#allocation2 + $0x37]] }
  0x2b   :  { %v185_v32 = vmul.f32 %v184_v23, %v1112_v0  ;;  %v1204_v33 = vmul.f32 %v184_v23, %v1123_v1  ;;  %v160_v35 = vmul.f32 %v159_v30, %v1112_v0  ;;  %v1211_v36 = vmul.f32 %v159_v30, %v1123_v1  ;;  %s1378_s7 = sld [smem:[#allocation2 + $0x3a]]  ;;  %s1380_s8 = sld [smem:[#allocation2 + $0x3d]] }
  0x2c   :  { %v154_v34 = vsel %vm139_vm0, %v152_v28, %v153_v29  ;;  %v1213_v37 = vadd.f32 %v179_v31, %v145_v27  ;;  %v196_v41 = vstv %s1152_s11  ;;  %v408_v54 = vstv %s968_s2  ;;  %s1382_s10 = sld [smem:[#allocation2 + $0x2]]  ;;  %s1384_s11 = sld [smem:[#allocation2 + $0x5]] }
  0x2d   :  { %v157_v38 = vadd.f32 %v154_v34, %v129_v20  ;;  %v189_v39 = vrot.slane %v185_v32, 2  ;;  %v190_v40 = vrot.slane %v1204_v33, 2  ;;  %v164_v42 = vrot.slane %v160_v35, 1  ;;  %2164 = sst [smem:[#allocation20_spill]] %s1364_s26  ;;  %s1388_s13 = sld [smem:[#allocation2 + $0x1d]] }
  0x2e   :  { %754 = vrot.lane.b32.xlu1 %v1187_v24, %s1081_s22  ;;  %752 = vrot.lane.b32.xlu0 %v1192_v25, %s1081_s22  ;;  %v165_v43 = vrot.slane %v1211_v36, 1  ;;  %v197_v44 = vmul.f32 %v196_v41, %v1112_v0  ;;  %v1224_v45 = vmul.f32 %v196_v41, %v1123_v1  ;;  %v409_v55 = vmul.f32 %v1139_v3, %v408_v54  ;;  %s980_s22 = sld [smem:[#allocation2 + $0x18]]  ;;  %2165 = sst [smem:[#allocation21_spill]] %s1366_s27 }
  0x2f   :  { %v191_v46 = vsel %vm176_vm1, %v189_v39, %v190_v40  ;;  %v1246_v56 = vmul.f32 %v1134_v2, %v408_v54  ;;  %v420_v57 = vstv %s995_s16  ;;  %v432_v58 = vstv %s1022_s17  ;;  %2166 = sst [smem:[#allocation22_spill]] %s1368_s28  ;;  %s1386_s12 = sld [smem:[#allocation2 + $0x8]] }
  0x30   :  { %v166_v47 = vsel %vm139_vm0, %v164_v42, %v165_v43  ;;  %v1232_v48 = vadd.f32 %v191_v46, %v157_v38  ;;  %v201_v49 = vrot.slane %v197_v44, 2  ;;  %v202_v50 = vrot.slane %v1224_v45, 2  ;;  %2167 = sst [smem:[#allocation23_spill]] %s1370_s30  ;;  %s1390_s14 = sld [smem:[#allocation2 + $0x20]] }
  0x31   :  { %v169_v51 = vadd.f32 %v166_v47, %v132_v26  ;;  %v421_v59 = vmul.f32 %v1139_v3, %v420_v57  ;;  %v1250_v60 = vmul.f32 %v1134_v2, %v420_v57  ;;  %v433_v61 = vmul.f32 %v1139_v3, %v432_v58  ;;  %2168 = sst [smem:[#allocation24_spill]] %s1372_s4  ;;  %s1392_s15 = sld [smem:[#allocation2 + $0x23]] }
  0x32   :  { %845 = vrot.lane.b32.xlu1 %v1187_v24, %s1082_s23  ;;  %843 = vrot.lane.b32.xlu0 %v1192_v25, %s1082_s23  ;;  %v203_v52 = vsel %vm176_vm1, %v201_v49, %v202_v50  ;;  %v1254_v62 = vmul.f32 %v1134_v2, %v432_v58  ;;  %v444_v63 = vstv %s971_s18  ;;  %v456_v0 = vstv %s998_s19  ;;  %s1007_s23 = sld [smem:[#allocation2 + $0x33]]  ;;  %2169 = sst [smem:[#allocation25_spill]] %s1374_s5 }
  0x33   :  { %v1242_v53 = vadd.f32 %v203_v52, %v169_v51  ;;  %v413_v5 = vrot.slane %v409_v55, 1  ;;  %v2091_v6 = vrot.slane %v1246_v56, 1  ;;  %v425_v8 = vrot.slane %v421_v59, 1  ;;  %2170 = sst [smem:[#allocation26_spill]] %s1376_s6  ;;  %s1394_s2 = sld [smem:[#allocation2 + $0x38]] }
  0x34   :  { %v445_v9 = vmul.f32 %v1139_v3, %v444_v63  ;;  %v1259_v11 = vmul.f32 %v1134_v2, %v444_v63  ;;  %v457_v13 = vmul.f32 %v1139_v3, %v456_v0  ;;  %v1263_v15 = vmul.f32 %v1134_v2, %v456_v0  ;;  %2171 = sst [smem:[#allocation27_spill]] %s1378_s7  ;;  %s1396_s16 = sld [smem:[#allocation2 + $0x3b]] }
  0x35   :  { %v2090_v16 = vrot.slane %v1250_v60, 1  ;;  %v437_v18 = vrot.slane %v433_v61, 1  ;;  %v2073_v20 = vrot.slane %v1254_v62, 1  ;;  %v468_v22 = vstv %s1025_s20  ;;  %2172 = sst [smem:[#allocation28_spill]] %s1380_s8  ;;  %s1398_s17 = sld [smem:[#allocation2 + $0x3e]] }
  0x36   :  { %v449_v23 = vrot.slane %v445_v9, 2  ;;  %v2075_v26 = vrot.slane %v1259_v11, 2  ;;  %v461_v27 = vrot.slane %v457_v13, 2  ;;  %v2074_v28 = vrot.slane %v1263_v15, 2  ;;  %2173 = sst [smem:[#allocation29_spill]] %s1382_s10  ;;  %s1402_s19 = sld [smem:[#allocation2 + $0x24]] }
  0x37   :  { %v469_v30 = vmul.f32 %v1139_v3, %v468_v22  ;;  %v1271_v31 = vmul.f32 %v1134_v2, %v468_v22  ;;  %v1277_v35 = vsel %vm139_vm0, %v413_v5, %v2091_v6  ;;  %v1282_v38 = vsel %vm139_vm0, %v425_v8, %v2090_v16  ;;  %2174 = sst [smem:[#allocation30_spill]] %s1384_s11  ;;  %s1400_s18 = sld [smem:[#allocation2 + $0x9]] }
  0x38   :  { %v1287_v39 = vsel %vm139_vm0, %v437_v18, %v2073_v20  ;;  %v1292_v41 = vsel %vm176_vm1, %v449_v23, %v2075_v26  ;;  %v1297_v42 = vsel %vm176_vm1, %v461_v27, %v2074_v28  ;;  %v680_v46 = vstv %s977_s0  ;;  %2175 = sst [smem:[#allocation31_spill]] %s1386_s12  ;;  %s1404_s20 = sld [smem:[#allocation2 + $0x3f]] }
  0x39   :  { %v473_v32 = vrot.slane %v469_v30, 2  ;;  %v2064_v34 = vrot.slane %v1271_v31, 2  ;;  %v692_v47 = vstv %s1004_s1  ;;  %v681_v49 = vmul.f32 %v1192_v25, %v680_v46  ;;  %2176 = sst [smem:[#allocation32_spill]] %s1388_s13  ;;  %s1406_s0 = sld [smem:[#allocation2 + $0xa]] }
  0x3a   :  { %v1306_v51 = vmul.f32 %v1187_v24, %v680_v46  ;;  %v693_v52 = vmul.f32 %v1192_v25, %v692_v47  ;;  %v1310_v54 = vmul.f32 %v1187_v24, %v692_v47  ;;  %v704_v55 = vstv %s1031_s21  ;;  %2177 = sst [smem:[#allocation33_spill]] %s1390_s14  ;;  %s1410_s21 = sld [smem:[#allocation2 + $0x10]] }
  0x3b   :  { %v1302_v44 = vsel %vm176_vm1, %v473_v32, %v2064_v34  ;;  %v716_v57 = vstv %s980_s22  ;;  %v728_v58 = vstv %s1007_s23  ;;  %v685_v59 = vrot.slane %v681_v49, 1  ;;  %2178 = sst [smem:[#allocation34_spill]] %s1392_s15  ;;  %s1408_s1 = sld [smem:[#allocation2 + $0xd]] }
  0x3c   :  { %2152 = vst [vmem:[#allocation8_spill] sm:$0xff] %v1306_v51  ;;  %2153 = vst [vmem:[#allocation9_spill] sm:$0xff] %v1310_v54  ;;  %v705_v61 = vmul.f32 %v1192_v25, %v704_v55  ;;  %v1314_v63 = vmul.f32 %v1187_v24, %v704_v55  ;;  %v2063_v0 = vrot.slane %v1306_v51, 1  ;;  %v697_v5 = vrot.slane %v693_v52, 1  ;;  %2179 = sst [smem:[#allocation35_spill]] %s1394_s2  ;;  %s1412_s22 = sld [smem:[#allocation2 + $0x25]] }
  0x3d   :  { %v717_v8 = vmul.f32 %v1192_v25, %v716_v57  ;;  %v1319_v9 = vmul.f32 %v1187_v24, %v716_v57  ;;  %v2062_v13 = vrot.slane %v1310_v54, 1  ;;  %v729_v22 = vmul.f32 %v1192_v25, %v728_v58  ;;  %2180 = sst [smem:[#allocation36_spill]] %s1396_s16  ;;  %s1422_s15 = sld [smem:[#allocation2 + $0x46]] }
  0x3e   :  { %2154 = vst [vmem:[#allocation10_spill] sm:$0xff] %v1314_v63  ;;  %v709_v18 = vrot.slane %v705_v61, 1  ;;  %v1324_v23 = vmul.f32 %v1187_v24, %v728_v58  ;;  %v2061_v27 = vrot.slane %v1314_v63, 1  ;;  %v740_v46 = vstv %s1034_s25  ;;  %2181 = sst [smem:[#allocation37_spill]] %s1398_s17  ;;  %s1414_s23 = sld [smem:[#allocation2 + $0x28]] }
  0x3f   :  { %2155 = vst [vmem:[#allocation11_spill] sm:$0xff] %v1319_v9  ;;  %v721_v30 = vrot.slane %v717_v8, 2  ;;  %v2058_v32 = vrot.slane %v1319_v9, 2  ;;  %v733_v47 = vrot.slane %v729_v22, 2  ;;  %v741_v52 = vmul.f32 %v1192_v25, %v740_v46  ;;  %2182 = sst [smem:[#allocation38_spill]] %s1406_s0  ;;  %s1416_s25 = sld [smem:[#allocation2 + $0x2b]] }
  0x40   :  { %2156 = vst [vmem:[#allocation12_spill] sm:$0xff] %v1324_v23  ;;  %v2057_v49 = vrot.slane %v1324_v23, 2  ;;  %v1331_v55 = vmul.f32 %v1187_v24, %v740_v46  ;;  %v1337_v58 = vsel %vm139_vm0, %v685_v59, %v2063_v0  ;;  %v1342_v8 = vsel %vm139_vm0, %v697_v5, %v2062_v13  ;;  %2184 = sst [smem:[#allocation40_spill]] %s1410_s21  ;;  %s1418_s3 = sld [smem:[#allocation2 + $0x40]] }
  0x41   :  { %v745_v57 = vrot.slane %v741_v52, 2  ;;  %2158 = vst [vmem:[#allocation14_spill] sm:$0xff] %v1337_v58  ;;  %2159 = vst [vmem:[#allocation15_spill] sm:$0xff] %v1342_v8  ;;  %v1347_v22 = vsel %vm139_vm0, %v709_v18, %v2061_v27  ;;  %v1352_v46 = vsel %vm176_vm1, %v721_v30, %v2058_v32  ;;  %2183 = sst [smem:[#allocation39_spill]] %s1408_s1  ;;  %s1426_s21 = sld [smem:[#allocation2 + $0xe]]  ;;  %v127_v18 = vmul.f32 %v125_v4, %v1123_v1 }
  0x42   :  { %2157 = vst [vmem:[#allocation13_spill] sm:$0xff] %v1331_v55  ;;  %v2056_v61 = vrot.slane %v1331_v55, 2  ;;  %2160 = vst [vmem:[#allocation16_spill] sm:$0xff] %v1347_v22  ;;  %v1357_v59 = vsel %vm176_vm1, %v733_v47, %v2057_v49  ;;  %2185 = sst [smem:[#allocation41_spill]] %s1412_s22  ;;  %s1420_s17 = sld [smem:[#allocation2 + $0x43]]  ;;  %v130_v30 = vmul.f32 %v128_v10, %v1123_v1  ;;  %v133_v47 = vmul.f32 %v131_v21, %v1123_v1 }
  0x43   :  { %2161 = vst [vmem:[#allocation17_spill] sm:$0xff] %v1352_v46  ;;  %2162 = vst [vmem:[#allocation18_spill] sm:$0xff] %v1357_v59  ;;  %s1424_s0 = sld [smem:[#allocation2 + $0xb]]  ;;  %s1428_s1 = sld [smem:[#allocation2 + $0x11]]  ;;  %v2144_v52 = vstv %s1364_s26  ;;  %v2141_v4 = vstv %s1376_s6  ;;  %v2139_v49 = vstv %s1368_s28  ;;  %v2138_v1 = vstv %s1372_s4 }
  0x44   :  { %v1362_v5 = vsel %vm176_vm1, %v745_v57, %v2056_v61  ;;  %s1430_s22 = sld [smem:[#allocation2 + $0x26]]  ;;  %v2143_v57 = vstv %s1370_s30  ;;  %v2140_v61 = vstv %s1366_s27  ;;  %s1456_s24 = sld [smem:[#allocation2 + $0x12]]  ;;  %v2137_v10 = vstv %s1378_s7 }
  0x45   :  { %2163 = vst [vmem:[#allocation19_spill] sm:$0xff] %v1362_v5  ;;  %2186 = sst [smem:[#allocation42_spill]] %s1416_s25  ;;  %s1432_s25 = sld [smem:[#allocation2 + $0x29]]  ;;  %v2142_v21 = vstv %s1374_s5  ;;  %v146_v27 = vadd.f32 %v141_v14, %v127_v18  ;;  %v158_v13 = vadd.f32 %v153_v29, %v130_v30  ;;  %v170_v0 = vadd.f32 %v165_v43, %v133_v47 }
  0x46   :  { %2187 = sst [smem:[#allocation43_spill]] %s1418_s3  ;;  %s1458_s29 = sld [smem:[#allocation2 + $0x2d]]  ;;  %v393_v34 = vstv %s1400_s18  ;;  %v398_v29 = vstv %s1402_s19  ;;  %v403_v36 = vstv %s1404_s20 }
  0x47   :  { %2188 = sst [smem:[#allocation44_spill]] %s1426_s21  ;;  %s1443_s21 = sld [smem:[#allocation2 + $0x2c]]  ;;  %v1499_v47 = vmul.f32 %v1139_v3, %v393_v34  ;;  %v1507_v16 = vadd.f32 %v178_v19, %v146_v27  ;;  %v1511_v6 = vadd.f32 %v190_v40, %v158_v13  ;;  %v1515_v30 = vadd.f32 %v202_v50, %v170_v0 }
  0x48   :  { %s1464_s9 = sld [smem:[#allocation2 + $0x48]]  ;;  %s1466_s6 = sld [smem:[#allocation2 + $0x13]]  ;;  %v1518_v18 = vmul.f32 %v1134_v2, %v393_v34  ;;  %v1525_v12 = vmul.f32 %v1139_v3, %v398_v29  ;;  %v1528_v19 = vmul.f32 %v1134_v2, %v398_v29  ;;  %v1531_v33 = vmul.f32 %v1139_v3, %v403_v36 }
  0x49   :  { %2189 = sst [smem:[#allocation45_spill]] %s1428_s1  ;;  %s1475_s8 = sld [smem:[#allocation2 + $0x16]]  ;;  %v1534_v40 = vmul.f32 %v1134_v2, %v403_v36 }
  0x4a   :  { %2190 = sst [smem:[#allocation46_spill]] %s1430_s22  ;;  %s1445_s1 = sld [smem:[#allocation2 + $0x41]]  ;;  %v665_v0 = vstv %s1456_s24 }
  0x4b   :  { %2191 = sst [smem:[#allocation47_spill]] %s1432_s25  ;;  %s1448_s22 = sld [smem:[#allocation2 + $0x44]]  ;;  %v1578_v27 = vmul.f32 %v1192_v25, %v665_v0  ;;  %v1581_v3 = vmul.f32 %v1187_v24, %v665_v0 }
  0x4c   :  { %s1450_s25 = sld [smem:[#allocation2 + $0x47]]  ;;  %s1477_s7 = sld [smem:[#allocation2 + $0x19]]  ;;  %v670_v34 = vstv %s1458_s29 }
  0x4d   :  { %2192 = sst [smem:[#allocation48_spill]] %s1443_s21  ;;  %s1483_s4 = sld [smem:[#allocation2 + $0x2e]]  ;;  %2225 = vst [vmem:[#allocation67_spill] sm:$0xff] %v1578_v27  ;;  %v1584_v43 = vmul.f32 %v1192_v25, %v670_v34  ;;  %v1587_v29 = vmul.f32 %v1187_v24, %v670_v34 }
  0x4e   :  { %2195 = sst [smem:[#allocation51_spill]] %s1466_s6  ;;  %s1485_s27 = sld [smem:[#allocation2 + $0x31]]  ;;  %v675_v2 = vstv %s1464_s9 }
  0x4f   :  { %2197 = sst [smem:[#allocation52_spill]] %s1475_s8  ;;  %s1491_s30 = sld [smem:[#allocation2 + $0x34]]  ;;  %2228 = vst [vmem:[#allocation68_spill] sm:$0xff] %v1584_v43  ;;  %2230 = vst [vmem:[#allocation69_spill] sm:$0xff] %v1587_v29  ;;  %v1590_v45 = vmul.f32 %v1192_v25, %v675_v2  ;;  %v1593_v13 = vmul.f32 %v1187_v24, %v675_v2 }
  0x50   :  { %s1493_s18 = sld [smem:[#allocation2 + $0x49]]  ;;  %s1501_s2 = sld [smem:[#allocation2 + $0x4c]] }
  0x51   :  { %2193 = sst [smem:[#allocation49_spill]] %s1448_s22  ;;  %s1503_s13 = sld [smem:[#allocation2 + $0x4f]]  ;;  %2231 = vst [vmem:[#allocation70_spill] sm:$0xff] %v1590_v45  ;;  %2232 = vst [vmem:[#allocation71_spill] sm:$0xff] %v1593_v13 }
  0x52   :  { %2194 = sst [smem:[#allocation50_spill]] %s1450_s25  ;;  %s1520_s20 = sld [smem:[#allocation2 + $0x14]] }
  0x53   :  { %2199 = sst [smem:[#allocation53_spill]] %s1483_s4  ;;  %s1522_s5 = sld [smem:[#allocation2 + $0x17]] }
  0x54   :  { %2200 = sst [smem:[#allocation54_spill]] %s1485_s27  ;;  %s1538_s14 = sld [smem:[#allocation2 + $0x2f]] }
  0x55   :  { %s1536_s16 = sld [smem:[#allocation2 + $0x1a]]  ;;  %s1554_s11 = sld [smem:[#allocation2 + $0x4d]] }
  0x56   :  { %s2211_s26 = sld [smem:[#allocation46_spill]]  ;;  %s1560_s19 = sld [smem:[#allocation2 + $0x50]] }
  0x57   :  { %2203 = sst [smem:[#allocation55_spill]] %s1503_s13  ;;  %s1546_s13 = sld [smem:[#allocation2 + $0x35]] }
  0x58   :  { %2205 = sst [smem:[#allocation56_spill]] %s1520_s20  ;;  %s1562_s3 = sld [smem:[#allocation4]] }
  0x59   :  { %2207 = sst [smem:[#allocation57_spill]] %s1522_s5  ;;  %s1544_s5 = sld [smem:[#allocation2 + $0x32]] }
  0x5a   :  { %2210 = sst [smem:[#allocation59_spill]] %s1538_s14  ;;  %s1552_s14 = sld [smem:[#allocation2 + $0x4a]] }
  0x5b   :  { %2209 = sst [smem:[#allocation58_spill]] %s1536_s16  ;;  %s1568_s12 = sld [smem:[#allocation4 + $0x1]] }
  0x5c   :  { %2218 = sst [smem:[#allocation62_spill]] %s1554_s11  ;;  %s2223_s24 = sld [smem:[#allocation55_spill]] }
  0x5d   :  { %2214 = sst [smem:[#allocation60_spill]] %s1546_s13  ;;  %s1570_s28 = sld [smem:[#allocation4 + $0x2]] }
  0x5e   :  { %2219 = sst [smem:[#allocation63_spill]] %s1560_s19  ;;  %s2224_s29 = sld [smem:[#allocation56_spill]] }
  0x5f   :  { %2212 = sst [smem:[#allocation46_spill]] %s1544_s5  ;;  %s2226_s9 = sld [smem:[#allocation59_spill]] }
  0x60   :  { %2216 = sst [smem:[#allocation61_spill]] %s1552_s14  ;;  %s2233_s25 = sld [smem:[#allocation20_spill]] }
  0x61   :  { %2220 = sst [smem:[#allocation64_spill]] %s1562_s3  ;;  %s2234_s21 = sld [smem:[#allocation23_spill]] }
  0x62   :  { %2221 = sst [smem:[#allocation65_spill]] %s1568_s12  ;;  %s2235_s10 = sld [smem:[#allocation26_spill]] }
  0x63   :  { %2222 = sst [smem:[#allocation66_spill]] %s1570_s28  ;;  %s2236_s16 = sld [smem:[#allocation21_spill]] }
  0x64   :  { %s2237_s6 = sld [smem:[#allocation24_spill]]  ;;  %s2238_s4 = sld [smem:[#allocation27_spill]] }
  0x65   :  { %s2239_s8 = sld [smem:[#allocation22_spill]]  ;;  %s2240_s27 = sld [smem:[#allocation25_spill]] }
  0x66   :  { %s2241_s20 = sld [smem:[#allocation28_spill]]  ;;  %s2242_s22 = sld [smem:[#allocation29_spill]] }
  0x67   :  { %s2243_s11 = sld [smem:[#allocation32_spill]]  ;;  %s2244_s19 = sld [smem:[#allocation35_spill]] }
  0x68   :  { %s2245_s28 = sld [smem:[#allocation30_spill]]  ;;  %s2246_s12 = sld [smem:[#allocation33_spill]]  ;;  %v2263_v58 = vstv %s2235_s10 }
  0x69   :  { %s2247_s3 = sld [smem:[#allocation36_spill]]  ;;  %s2248_s13 = sld [smem:[#allocation31_spill]] }
  0x6a   :  { %s2249_s5 = sld [smem:[#allocation34_spill]]  ;;  %s2250_s14 = sld [smem:[#allocation37_spill]]  ;;  %v2266_v46 = vstv %s2238_s4 }
  0x6b   :  { %v2267_v22 = vstv %s2239_s8  ;;  %s2286_s4 = sld [smem:[#allocation39_spill]]  ;;  %s2313_s8 = sld [smem:[#allocation44_spill]] }
  0x6c   :  { %s2314_s10 = sld [smem:[#allocation47_spill]] }
  0x6e   :  { %v2255_v59 = vstv %s2245_s28 }
  0x90   :  { %v209_v28 = vpop.permute.xlu0 %208 }
  0x91   :  { %v213_v26 = vmul.f32 %v2144_v52, %v209_v28  ;;  %v218_v24 = vmul.f32 %v2143_v57, %v209_v28  ;;  %v223_v2 = vmul.f32 %v2141_v4, %v209_v28  ;;  %v228_v36 = vmul.f32 %v2140_v61, %v209_v28  ;;  %v300_v61 = vpop.permute.xlu1 %299 }
  0x92   :  { %v240_v50 = vmul.f32 %v2138_v1, %v209_v28  ;;  %v252_v34 = vmul.f32 %v2137_v10, %v209_v28  ;;  %v264_v20 = vmul.f32 %v2139_v49, %v209_v28  ;;  %v276_v32 = vmul.f32 %v2142_v21, %v209_v28 }
  0x93   :  { %v215_v25 = vadd.f32 %v213_v26, %v1213_v37  ;;  %v220_v7 = vadd.f32 %v218_v24, %v1232_v48  ;;  %v225_v0 = vadd.f32 %v223_v2, %v1242_v53  ;;  %v232_v14 = vrot.slane %v228_v36, 1 }
  0x94   :  { %v244_v17 = vrot.slane %v240_v50, 1  ;;  %v256_v10 = vrot.slane %v252_v34, 1  ;;  %v268_v1 = vrot.slane %v264_v20, 2  ;;  %v280_v49 = vrot.slane %v276_v32, 2  ;;  %v211_v4 = vpop.permute.xlu0 %210 }
  0x95   :  { %v2251_v21 = vstv %s2241_s20  ;;  %v2252_v52 = vstv %s2242_s22  ;;  %v2253_v26 = vstv %s2243_s11  ;;  %v2254_v48 = vstv %s2244_s19  ;;  %v302_v54 = vpop.permute.xlu1 %301 }
  0x96   :  { %v288_v57 = vmul.f32 %v2251_v21, %v209_v28  ;;  %v304_v37 = vmul.f32 %v2252_v52, %v300_v61  ;;  %v309_v5 = vmul.f32 %v2253_v26, %v300_v61  ;;  %v314_v24 = vmul.f32 %v2254_v48, %v300_v61 }
  0x97   :  { %v1645_v53 = vmul.f32 %v2255_v59, %v300_v61  ;;  %v2256_v50 = vstv %s2246_s12  ;;  %v2257_v20 = vstv %s2247_s3  ;;  %v2258_v34 = vstv %s2248_s13 }
  0x98   :  { %v1649_v36 = vmul.f32 %v2256_v50, %v300_v61  ;;  %v1653_v32 = vmul.f32 %v2257_v20, %v300_v61  ;;  %v1657_v28 = vmul.f32 %v2258_v34, %v300_v61  ;;  %v292_v52 = vrot.slane %v288_v57, 2 }
  0x99   :  { %v2259_v21 = vstv %s2249_s5  ;;  %v2260_v26 = vstv %s2250_s14  ;;  %v2261_v48 = vstv %s2233_s25  ;;  %v224_v45 = vmul.f32 %v2263_v58, %v211_v4  ;;  %s2399_s25 = sld [smem:[#allocation65_spill]] }
  0x9a   :  { %v1661_v2 = vmul.f32 %v2259_v21, %v300_v61  ;;  %v1665_v59 = vmul.f32 %v2260_v26, %v300_v61  ;;  %v214_v50 = vmul.f32 %v2261_v48, %v211_v4  ;;  %v2262_v61 = vstv %s2234_s21  ;;  %s2387_s21 = sld [smem:[#allocation60_spill]] }
  0x9b   :  { %v219_v26 = vmul.f32 %v2262_v61, %v211_v4  ;;  %v2264_v48 = vstv %s2236_s16  ;;  %v2265_v20 = vstv %s2237_s6  ;;  %v253_v55 = vmul.f32 %v2266_v46, %v211_v4  ;;  %s2294_s6 = sld [smem:[#allocation42_spill]]  ;;  %s2345_s16 = sld [smem:[#allocation52_spill]] }
  0x9c   :  { %v216_v8 = vadd.f32 %v214_v50, %v1507_v16  ;;  %v229_v43 = vmul.f32 %v2264_v48, %v211_v4  ;;  %v241_v27 = vmul.f32 %v2265_v20, %v211_v4  ;;  %v265_v23 = vmul.f32 %v2267_v22, %v211_v4 }
  0x9d   :  { %v221_v34 = vadd.f32 %v219_v26, %v1511_v6  ;;  %v2268_v57 = vstv %s2240_s27  ;;  %v2269_v21 = vstv %s2241_s20  ;;  %v226_v16 = vadd.f32 %v224_v45, %v1515_v30  ;;  %s2272_s27 = sld [smem:[#allocation38_spill]] }
  0x9e   :  { %v277_v9 = vmul.f32 %v2268_v57, %v211_v4  ;;  %v289_v63 = vmul.f32 %v2269_v21, %v211_v4  ;;  %v233_v50 = vrot.slane %v229_v43, 1  ;;  %v245_v61 = vrot.slane %v241_v27, 1 }
  0x9f   :  { %v257_v58 = vrot.slane %v253_v55, 1  ;;  %v269_v51 = vrot.slane %v265_v23, 2  ;;  %v2270_v20 = vstv %s2242_s22  ;;  %v2274_v21 = vstv %s2245_s28  ;;  %s2283_s28 = sld [smem:[#allocation43_spill]]  ;;  %s2392_s22 = sld [smem:[#allocation63_spill]] }
  0xa0   :  { %v281_v48 = vrot.slane %v277_v9, 2  ;;  %v293_v13 = vrot.slane %v289_v63, 2  ;;  %v305_v29 = vmul.f32 %v2270_v20, %v302_v54  ;;  %v234_v46 = vsel %vm139_vm0, %v232_v14, %v233_v50 }
  0xa1   :  { %v238_v6 = vadd.f32 %v233_v50, %v216_v8  ;;  %v246_v22 = vsel %vm139_vm0, %v244_v17, %v245_v61  ;;  %v250_v26 = vadd.f32 %v245_v61, %v221_v34  ;;  %v237_v57 = vadd.f32 %v234_v46, %v215_v25  ;;  %v483_v50 = vpop.permute.xlu1 %482 }
  0xa2   :  { %v249_v4 = vadd.f32 %v246_v22, %v220_v7  ;;  %v258_v30 = vsel %vm139_vm0, %v256_v10, %v257_v58  ;;  %v262_v43 = vadd.f32 %v257_v58, %v226_v16  ;;  %v270_v9 = vsel %vm176_vm1, %v268_v1, %v269_v51 }
  0xa3   :  { %v261_v55 = vadd.f32 %v258_v30, %v225_v0  ;;  %v274_v63 = vadd.f32 %v269_v51, %v238_v6  ;;  %v282_v23 = vsel %vm176_vm1, %v280_v49, %v281_v48  ;;  %v273_v14 = vadd.f32 %v270_v9, %v237_v57 }
  0xa4   :  { %v285_v8 = vadd.f32 %v282_v23, %v249_v4  ;;  %v286_v17 = vadd.f32 %v281_v48, %v250_v26  ;;  %v294_v45 = vsel %vm176_vm1, %v292_v52, %v293_v13  ;;  %v298_v10 = vadd.f32 %v293_v13, %v262_v43 }
  0xa5   :  { %v297_v7 = vadd.f32 %v294_v45, %v261_v55  ;;  %v307_v27 = vadd.f32 %v305_v29, %v274_v63  ;;  %v2271_v25 = vstv %s2243_s11  ;;  %v306_v0 = vadd.f32 %v304_v37, %v273_v14  ;;  %s2315_s11 = sld [smem:[#allocation49_spill]] }
  0xa6   :  { %v310_v34 = vmul.f32 %v2271_v25, %v302_v54  ;;  %v311_v51 = vadd.f32 %v309_v5, %v285_v8  ;;  %v2273_v1 = vstv %s2244_s19  ;;  %v320_v16 = vmul.f32 %v2274_v21, %v302_v54 }
  0xa7   :  { %v315_v49 = vmul.f32 %v2273_v1, %v302_v54  ;;  %v316_v58 = vadd.f32 %v314_v24, %v297_v7  ;;  %v2275_v48 = vstv %s2246_s12  ;;  %v2276_v20 = vstv %s2247_s3  ;;  %s2282_s3 = sld [smem:[#allocation41_spill]]  ;;  %s2317_s12 = sld [smem:[#allocation45_spill]] }
  0xa8   :  { %v312_v61 = vadd.f32 %v310_v34, %v286_v17  ;;  %v332_v52 = vmul.f32 %v2275_v48, %v302_v54  ;;  %v344_v46 = vmul.f32 %v2276_v20, %v302_v54  ;;  %v324_v13 = vrot.slane %v320_v16, 1 }
  0xa9   :  { %v317_v6 = vadd.f32 %v315_v49, %v298_v10  ;;  %v2277_v29 = vstv %s2248_s13  ;;  %v2278_v26 = vstv %s2249_s5  ;;  %v2279_v5 = vstv %s2250_s14  ;;  %s2288_s5 = sld [smem:[#allocation40_spill]]  ;;  %s2319_s14 = sld [smem:[#allocation50_spill]] }
  0xaa   :  { %v356_v22 = vmul.f32 %v2277_v29, %v302_v54  ;;  %v368_v57 = vmul.f32 %v2278_v26, %v302_v54  ;;  %v336_v37 = vrot.slane %v332_v52, 1  ;;  %v348_v4 = vrot.slane %v344_v46, 1  ;;  %s2318_s13 = sld [smem:[#allocation48_spill]] }
  0xab   :  { %v380_v30 = vmul.f32 %v2279_v5, %v302_v54  ;;  %v2280_v43 = vstv %s2272_s27  ;;  %v2281_v9 = vrot.slane %v1645_v53, 1  ;;  %v329_v63 = vadd.f32 %v324_v13, %v307_v27 }
  0xac   :  { %v486_v55 = vmul.f32 %v2280_v43, %v483_v50  ;;  %v360_v23 = vrot.slane %v356_v22, 2  ;;  %v372_v14 = vrot.slane %v368_v57, 2  ;;  %v2284_v17 = vrot.slane %v1649_v36, 1 }
  0xad   :  { %v325_v24 = vsel %vm139_vm0, %v2281_v9, %v324_v13  ;;  %v341_v7 = vadd.f32 %v336_v37, %v312_v61  ;;  %v2285_v10 = vrot.slane %v1653_v32, 1  ;;  %v353_v34 = vadd.f32 %v348_v4, %v317_v6 }
  0xae   :  { %v328_v8 = vadd.f32 %v325_v24, %v306_v0  ;;  %v337_v45 = vsel %vm139_vm0, %v2284_v17, %v336_v37  ;;  %v2287_v27 = vrot.slane %v1657_v28, 2  ;;  %v365_v36 = vadd.f32 %v360_v23, %v329_v63 }
  0xaf   :  { %v349_v54 = vsel %vm139_vm0, %v2285_v10, %v348_v4  ;;  %v340_v53 = vadd.f32 %v337_v45, %v311_v51  ;;  %v2289_v49 = vrot.slane %v1661_v2, 2  ;;  %v377_v32 = vadd.f32 %v372_v14, %v341_v7 }
  0xb0   :  { %v352_v25 = vadd.f32 %v349_v54, %v316_v58  ;;  %v361_v1 = vsel %vm176_vm1, %v2287_v27, %v360_v23  ;;  %v384_v61 = vrot.slane %v380_v30, 2  ;;  %v2290_v48 = vstv %s2282_s3 }
  0xb1   :  { %v364_v0 = vadd.f32 %v361_v1, %v328_v8  ;;  %v373_v21 = vsel %vm176_vm1, %v2289_v49, %v372_v14  ;;  %v491_v52 = vmul.f32 %v2290_v48, %v483_v50  ;;  %v2291_v51 = vstv %s2283_s28 }
  0xb2   :  { %v376_v16 = vadd.f32 %v373_v21, %v340_v53  ;;  %v496_v58 = vmul.f32 %v2291_v51, %v483_v50  ;;  %v397_v20 = vadd.f32 %v1518_v18, %v365_v36  ;;  %v402_v28 = vadd.f32 %v1528_v19, %v377_v32 }
  0xb3   :  { %v2292_v46 = vstv %s2286_s4  ;;  %v2293_v13 = vstv %s1414_s23  ;;  %v2295_v2 = vrot.slane %v1665_v59, 2  ;;  %v389_v26 = vadd.f32 %v384_v61, %v353_v34  ;;  %s2398_s23 = sld [smem:[#allocation64_spill]] }
  0xb4   :  { %v501_v6 = vmul.f32 %v2292_v46, %v483_v50  ;;  %v513_v29 = vmul.f32 %v2293_v13, %v483_v50  ;;  %v2296_v57 = vstv %s1420_s17  ;;  %v2297_v4 = vstv %s2288_s5  ;;  %s2346_s17 = sld [smem:[#allocation54_spill]] }
  0xb5   :  { %v385_v22 = vsel %vm176_vm1, %v2295_v2, %v384_v61  ;;  %v1750_v37 = vmul.f32 %v2296_v57, %v483_v50  ;;  %v1754_v5 = vmul.f32 %v2297_v4, %v483_v50  ;;  %v2298_v19 = vrot.slane %v1246_v56, 1 }
  0xb6   :  { %v388_v18 = vadd.f32 %v385_v22, %v352_v25  ;;  %v2299_v43 = vrot.slane %v1250_v60, 1  ;;  %v505_v24 = vrot.slane %v501_v6, 1  ;;  %v407_v59 = vadd.f32 %v1534_v40, %v389_v26  ;;  %v481_v25 = vpop.permute.xlu0 %480 }
  0xb7   :  { %v419_v30 = vadd.f32 %v2298_v19, %v397_v20  ;;  %v517_v63 = vrot.slane %v513_v29, 1  ;;  %v529_v23 = vrot.slane %v1750_v37, 1  ;;  %v541_v14 = vrot.slane %v1754_v5, 2  ;;  %v574_v29 = vpop.permute.xlu1 %573 }
  0xb8   :  { %v431_v9 = vadd.f32 %v2299_v43, %v402_v28  ;;  %v2300_v8 = vrot.slane %v1259_v11, 2  ;;  %v2301_v45 = vrot.slane %v1263_v15, 2  ;;  %v2302_v10 = vstv %s2294_s6 }
  0xb9   :  { %v1769_v56 = vmul.f32 %v2302_v10, %v483_v50  ;;  %v2303_v54 = vstv %s1422_s15  ;;  %v2304_v53 = vrot.slane %v1254_v62, 1  ;;  %v396_v34 = vadd.f32 %v1499_v47, %v364_v0  ;;  %s2344_s15 = sld [smem:[#allocation53_spill]] }
  0xba   :  { %v455_v17 = vadd.f32 %v2300_v8, %v419_v30  ;;  %v467_v7 = vadd.f32 %v2301_v45, %v431_v9  ;;  %v1773_v60 = vmul.f32 %v2303_v54, %v483_v50  ;;  %v401_v11 = vadd.f32 %v1525_v12, %v376_v16 }
  0xbb   :  { %v443_v40 = vadd.f32 %v2304_v53, %v407_v59  ;;  %v406_v27 = vadd.f32 %v1531_v33, %v388_v18  ;;  %v553_v36 = vrot.slane %v1769_v56, 2  ;;  %v2305_v49 = vrot.slane %v1271_v31, 2 }
  0xbc   :  { %v488_v15 = vadd.f32 %v486_v55, %v455_v17  ;;  %v493_v1 = vadd.f32 %v491_v52, %v467_v7  ;;  %v565_v50 = vrot.slane %v1773_v60, 2  ;;  %v418_v21 = vadd.f32 %v1277_v35, %v396_v34 }
  0xbd   :  { %v479_v62 = vadd.f32 %v2305_v49, %v443_v40  ;;  %v430_v32 = vadd.f32 %v1282_v38, %v401_v11  ;;  %v442_v47 = vadd.f32 %v1287_v39, %v406_v27  ;;  %v2306_v55 = vstv %s2272_s27 }
  0xbe   :  { %v510_v12 = vadd.f32 %v505_v24, %v488_v15  ;;  %v522_v33 = vadd.f32 %v517_v63, %v493_v1  ;;  %v485_v0 = vmul.f32 %v2306_v55, %v481_v25  ;;  %v2307_v16 = vmov %v2290_v48 }
  0xbf   :  { %v490_v61 = vmul.f32 %v2307_v16, %v481_v25  ;;  %v498_v48 = vadd.f32 %v496_v58, %v479_v62  ;;  %v454_v31 = vadd.f32 %v1292_v41, %v418_v21  ;;  %v466_v52 = vadd.f32 %v1297_v42, %v430_v32 }
  0xc0   :  { %v478_v35 = vadd.f32 %v1302_v44, %v442_v47  ;;  %v546_v38 = vadd.f32 %v541_v14, %v510_v12  ;;  %v558_v39 = vadd.f32 %v553_v36, %v522_v33  ;;  %v495_v20 = vmul.f32 %v2291_v51, %v481_v25 }
  0xc1   :  { %v2308_v28 = vmov %v2292_v46  ;;  %v534_v58 = vadd.f32 %v529_v23, %v498_v48  ;;  %v487_v6 = vadd.f32 %v485_v0, %v454_v31  ;;  %v492_v41 = vadd.f32 %v490_v61, %v466_v52 }
  0xc2   :  { %v500_v46 = vmul.f32 %v2308_v28, %v481_v25  ;;  %v512_v42 = vmul.f32 %v2293_v13, %v481_v25  ;;  %v497_v44 = vadd.f32 %v495_v20, %v478_v35  ;;  %v2309_v22 = vmov %v2296_v57 }
  0xc3   :  { %v524_v26 = vmul.f32 %v2309_v22, %v481_v25  ;;  %v2310_v57 = vmov %v2297_v4  ;;  %v570_v4 = vadd.f32 %v565_v50, %v534_v58  ;;  %v2311_v19 = vmov %v2302_v10 }
  0xc4   :  { %v504_v2 = vrot.slane %v500_v46, 1  ;;  %v536_v37 = vmul.f32 %v2310_v57, %v481_v25  ;;  %v516_v18 = vrot.slane %v512_v42, 1  ;;  %v548_v30 = vmul.f32 %v2311_v19, %v481_v25  ;;  %v2331_v19 = vld [vmem:[#allocation69_spill] sm:$0xff] }
  0xc5   :  { %v2312_v43 = vmov %v2303_v54  ;;  %v528_v8 = vrot.slane %v524_v26, 1  ;;  %v2316_v45 = vstv %s1424_s0  ;;  %v2320_v27 = vstv %s2211_s26  ;;  %s2343_s26 = sld [smem:[#allocation51_spill]]  ;;  %s2381_s0 = sld [smem:[#allocation61_spill]] }
  0xc6   :  { %v560_v9 = vmul.f32 %v2312_v43, %v481_v25  ;;  %v506_v59 = vsel %vm139_vm0, %v504_v2, %v505_v24  ;;  %v540_v17 = vrot.slane %v536_v37, 2  ;;  %v577_v7 = vmul.f32 %v2316_v45, %v574_v29 }
  0xc7   :  { %v509_v10 = vadd.f32 %v506_v59, %v487_v6  ;;  %v518_v54 = vsel %vm139_vm0, %v516_v18, %v517_v63  ;;  %v552_v53 = vrot.slane %v548_v30, 2  ;;  %v530_v11 = vsel %vm139_vm0, %v528_v8, %v529_v23  ;;  %v2334_v8 = vld [vmem:[#allocation71_spill] sm:$0xff] }
  0xc8   :  { %v564_v40 = vrot.slane %v560_v9, 2  ;;  %v521_v34 = vadd.f32 %v518_v54, %v492_v41  ;;  %v579_v25 = vadd.f32 %v577_v7, %v546_v38  ;;  %v582_v15 = vmul.f32 %v2320_v27, %v574_v29  ;;  %v572_v38 = vpop.permute.xlu0 %571 }
  0xc9   :  { %v533_v24 = vadd.f32 %v530_v11, %v497_v44  ;;  %v2321_v1 = vstv %s1445_s1  ;;  %v2322_v62 = vstv %s2313_s8  ;;  %v2323_v32 = vstv %s2314_s10  ;;  %s2382_s1 = sld [smem:[#allocation57_spill]] }
  0xca   :  { %v587_v49 = vmul.f32 %v2321_v1, %v574_v29  ;;  %v592_v21 = vmul.f32 %v2322_v62, %v574_v29  ;;  %v604_v47 = vmul.f32 %v2323_v32, %v574_v29  ;;  %v584_v12 = vadd.f32 %v582_v15, %v558_v39 }
  0xcb   :  { %v2324_v33 = vstv %s2315_s11  ;;  %v2325_v63 = vstv %s2317_s12  ;;  %v2326_v16 = vstv %s2318_s13  ;;  %v2327_v52 = vstv %s2319_s14 }
  0xcc   :  { %v616_v55 = vmul.f32 %v2324_v33, %v574_v29  ;;  %v628_v0 = vmul.f32 %v2325_v63, %v574_v29  ;;  %v640_v61 = vmul.f32 %v2326_v16, %v574_v29  ;;  %v589_v48 = vadd.f32 %v587_v49, %v570_v4 }
  0xcd   :  { %v596_v23 = vrot.slane %v592_v21, 1  ;;  %v608_v31 = vrot.slane %v604_v47, 1  ;;  %v652_v35 = vmul.f32 %v2327_v52, %v574_v29  ;;  %v542_v39 = vsel %vm176_vm1, %v540_v17, %v541_v14  ;;  %v2341_v21 = vld [vmem:[#allocation9_spill] sm:$0xff] }
  0xce   :  { %v620_v51 = vrot.slane %v616_v55, 1  ;;  %v632_v20 = vrot.slane %v628_v0, 2  ;;  %v644_v28 = vrot.slane %v640_v61, 2  ;;  %v545_v41 = vadd.f32 %v542_v39, %v509_v10 }
  0xcf   :  { %v601_v46 = vadd.f32 %v596_v23, %v579_v25  ;;  %v613_v58 = vadd.f32 %v608_v31, %v584_v12  ;;  %v656_v6 = vrot.slane %v652_v35, 2  ;;  %v554_v42 = vsel %vm176_vm1, %v552_v53, %v553_v36 }
  0xd0   :  { %v625_v13 = vadd.f32 %v620_v51, %v589_v48  ;;  %v566_v29 = vsel %vm176_vm1, %v564_v40, %v565_v50  ;;  %v2328_v5 = vmov %v2316_v45  ;;  %v557_v22 = vadd.f32 %v554_v42, %v521_v34 }
  0xd1   :  { %v576_v44 = vmul.f32 %v2328_v5, %v572_v38  ;;  %v637_v14 = vadd.f32 %v632_v20, %v601_v46  ;;  %v649_v2 = vadd.f32 %v644_v28, %v613_v58  ;;  %v569_v26 = vadd.f32 %v566_v29, %v533_v24 }
  0xd2   :  { %v661_v57 = vadd.f32 %v656_v6, %v625_v13  ;;  %v2329_v4 = vmov %v2320_v27  ;;  %v2330_v18 = vmov %v2321_v1  ;;  %v2332_v30 = vmov %v2322_v62  ;;  %v2339_v1 = vld [vmem:[#allocation8_spill] sm:$0xff]  ;;  %v2349_v13 = vld [vmem:[#allocation11_spill] sm:$0xff] }
  0xd3   :  { %v578_v37 = vadd.f32 %v576_v44, %v545_v41  ;;  %v581_v56 = vmul.f32 %v2329_v4, %v572_v38  ;;  %v586_v36 = vmul.f32 %v2330_v18, %v572_v38  ;;  %v669_v60 = vadd.f32 %v1581_v3, %v637_v14  ;;  %v2351_v44 = vld [vmem:[#allocation12_spill] sm:$0xff] }
  0xd4   :  { %v674_v50 = vadd.f32 %v2331_v19, %v649_v2  ;;  %v591_v43 = vmul.f32 %v2332_v30, %v572_v38  ;;  %v2333_v9 = vmov %v2323_v32  ;;  %v679_v17 = vadd.f32 %v2334_v8, %v661_v57 }
  0xd5   :  { %v603_v59 = vmul.f32 %v2333_v9, %v572_v38  ;;  %v583_v45 = vadd.f32 %v581_v56, %v557_v22  ;;  %v588_v7 = vadd.f32 %v586_v36, %v569_v26  ;;  %v2335_v10 = vmov %v2324_v33 }
  0xd6   :  { %v615_v54 = vmul.f32 %v2335_v10, %v572_v38  ;;  %v595_v53 = vrot.slane %v591_v43, 1  ;;  %v2336_v34 = vmov %v2325_v63  ;;  %v2337_v25 = vmov %v2326_v16 }
  0xd7   :  { %v607_v40 = vrot.slane %v603_v59, 1  ;;  %v627_v11 = vmul.f32 %v2336_v34, %v572_v38  ;;  %v639_v27 = vmul.f32 %v2337_v25, %v572_v38  ;;  %v2338_v3 = vmov %v2327_v52  ;;  %v755_v52 = vpop.permute.xlu1 %754 }
  0xd8   :  { %v619_v15 = vrot.slane %v615_v54, 1  ;;  %v651_v24 = vmul.f32 %v2338_v3, %v572_v38  ;;  %v2340_v49 = vrot.slane %v2339_v1, 1  ;;  %v2342_v32 = vrot.slane %v2341_v21, 1 }
  0xd9   :  { %v597_v12 = vsel %vm139_vm0, %v595_v53, %v596_v23  ;;  %v609_v33 = vsel %vm139_vm0, %v607_v40, %v608_v31  ;;  %v631_v55 = vrot.slane %v627_v11, 2  ;;  %v643_v63 = vrot.slane %v639_v27, 2  ;;  %v2347_v31 = vld [vmem:[#allocation10_spill] sm:$0xff] }
  0xda   :  { %v691_v62 = vadd.f32 %v2340_v49, %v669_v60  ;;  %v703_v47 = vadd.f32 %v2342_v32, %v674_v50  ;;  %v600_v0 = vadd.f32 %v597_v12, %v578_v37  ;;  %v612_v16 = vadd.f32 %v609_v33, %v583_v45  ;;  %v753_v45 = vpop.permute.xlu0 %752  ;;  %v2366_v49 = vld [vmem:[#allocation70_spill] sm:$0xff] }
  0xdb   :  { %v621_v61 = vsel %vm139_vm0, %v619_v15, %v620_v51  ;;  %v655_v48 = vrot.slane %v651_v24, 2  ;;  %v633_v38 = vsel %vm176_vm1, %v631_v55, %v632_v20  ;;  %v645_v23 = vsel %vm176_vm1, %v643_v63, %v644_v28  ;;  %v2353_v20 = vld [vmem:[#allocation13_spill] sm:$0xff]  ;;  %v2364_v15 = vld [vmem:[#allocation67_spill] sm:$0xff] }
  0xdc   :  { %v624_v35 = vadd.f32 %v621_v61, %v588_v7  ;;  %v2348_v39 = vrot.slane %v2347_v31, 1  ;;  %v636_v58 = vadd.f32 %v633_v38, %v600_v0  ;;  %v648_v41 = vadd.f32 %v645_v23, %v612_v16  ;;  %v2365_v24 = vld [vmem:[#allocation68_spill] sm:$0xff]  ;;  %v2371_v61 = vld [vmem:[#allocation14_spill] sm:$0xff]  ;;  %v2373_v38 = vld [vmem:[#allocation16_spill] sm:$0xff] }
  0xdd   :  { %v657_v51 = vsel %vm176_vm1, %v655_v48, %v656_v6  ;;  %v2350_v42 = vrot.slane %v2349_v13, 2  ;;  %v2352_v14 = vrot.slane %v2351_v44, 2  ;;  %v2354_v22 = vrot.slane %v2353_v20, 2  ;;  %v2380_v20 = vld [vmem:[#allocation19_spill] sm:$0xff] }
  0xde   :  { %v715_v46 = vadd.f32 %v2348_v39, %v679_v17  ;;  %v660_v5 = vadd.f32 %v657_v51, %v624_v35  ;;  %v2355_v28 = vstv %s2343_s26  ;;  %v2356_v37 = vstv %s2344_s15 }
  0xdf   :  { %v727_v29 = vadd.f32 %v2350_v42, %v691_v62  ;;  %v739_v2 = vadd.f32 %v2352_v14, %v703_v47  ;;  %v758_v57 = vmul.f32 %v2355_v28, %v755_v52  ;;  %v763_v4 = vmul.f32 %v2356_v37, %v755_v52  ;;  %v2379_v14 = vld [vmem:[#allocation18_spill] sm:$0xff] }
  0xe0   :  { %v751_v26 = vadd.f32 %v2354_v22, %v715_v46  ;;  %v2357_v56 = vstv %s1493_s18  ;;  %v2358_v36 = vstv %s2345_s16  ;;  %v2359_v6 = vstv %s2346_s17  ;;  %s2400_s18 = sld [smem:[#allocation66_spill]] }
  0xe1   :  { %v768_v18 = vmul.f32 %v2357_v56, %v755_v52  ;;  %v1891_v60 = vmul.f32 %v2358_v36, %v755_v52  ;;  %v1895_v19 = vmul.f32 %v2359_v6, %v755_v52  ;;  %v760_v50 = vadd.f32 %v758_v57, %v727_v29 }
  0xe2   :  { %v2360_v30 = vstv %s1501_s2  ;;  %v2361_v9 = vstv %s1477_s7  ;;  %v2362_v8 = vstv %s1491_s30  ;;  %v765_v7 = vadd.f32 %v763_v4, %v739_v2  ;;  %s2384_s7 = sld [smem:[#allocation46_spill]]  ;;  %s2386_s2 = sld [smem:[#allocation58_spill]] }
  0xe3   :  { %v1899_v43 = vmul.f32 %v2360_v30, %v755_v52  ;;  %v1903_v59 = vmul.f32 %v2361_v9, %v755_v52  ;;  %v1907_v17 = vmul.f32 %v2362_v8, %v755_v52  ;;  %v770_v10 = vadd.f32 %v768_v18, %v751_v26  ;;  %s2385_s30 = sld [smem:[#allocation62_spill]] }
  0xe4   :  { %v777_v54 = vrot.slane %v1891_v60, 1  ;;  %v789_v53 = vrot.slane %v1895_v19, 1  ;;  %v2363_v25 = vstv %s2223_s24  ;;  %v668_v3 = vadd.f32 %v2364_v15, %v636_v58  ;;  %s2404_s24 = sld [smem:[#allocation72_spill]] }
  0xe5   :  { %v801_v40 = vrot.slane %v1899_v43, 1  ;;  %v813_v34 = vrot.slane %v1903_v59, 2  ;;  %v825_v11 = vrot.slane %v1907_v17, 2  ;;  %v1916_v27 = vmul.f32 %v2363_v25, %v755_v52  ;;  %v2372_v52 = vld [vmem:[#allocation15_spill] sm:$0xff] }
  0xe6   :  { %v673_v1 = vadd.f32 %v2365_v24, %v648_v41  ;;  %v678_v62 = vadd.f32 %v2366_v49, %v660_v5  ;;  %v2367_v21 = vmov %v2355_v28  ;;  %v2368_v12 = vmov %v2356_v37  ;;  %v2378_v5 = vld [vmem:[#allocation17_spill] sm:$0xff]  ;;  %v846_v28 = vpop.permute.xlu1 %845 }
  0xe7   :  { %v757_v32 = vmul.f32 %v2367_v21, %v753_v45  ;;  %v837_v47 = vrot.slane %v1916_v27, 2  ;;  %v762_v33 = vmul.f32 %v2368_v12, %v753_v45  ;;  %v2369_v55 = vmov %v2357_v56 }
  0xe8   :  { %v767_v63 = vmul.f32 %v2369_v55, %v753_v45  ;;  %v2370_v0 = vmov %v2358_v36  ;;  %v690_v48 = vadd.f32 %v2371_v61, %v668_v3  ;;  %v702_v35 = vadd.f32 %v2372_v52, %v673_v1 }
  0xe9   :  { %v772_v16 = vmul.f32 %v2370_v0, %v753_v45  ;;  %v714_v23 = vadd.f32 %v2373_v38, %v678_v62  ;;  %v2374_v31 = vmov %v2359_v6  ;;  %v2375_v58 = vmov %v2360_v30 }
  0xea   :  { %v784_v39 = vmul.f32 %v2374_v31, %v753_v45  ;;  %v796_v41 = vmul.f32 %v2375_v58, %v753_v45  ;;  %v2376_v51 = vmov %v2361_v9  ;;  %v2377_v42 = vmov %v2362_v8 }
  0xeb   :  { %v776_v46 = vrot.slane %v772_v16, 1  ;;  %v808_v13 = vmul.f32 %v2376_v51, %v753_v45  ;;  %v820_v29 = vmul.f32 %v2377_v42, %v753_v45  ;;  %v726_v44 = vadd.f32 %v2378_v5, %v690_v48 }
  0xec   :  { %v738_v2 = vadd.f32 %v2379_v14, %v702_v35  ;;  %v750_v22 = vadd.f32 %v2380_v20, %v714_v23  ;;  %v788_v26 = vrot.slane %v784_v39, 1  ;;  %v800_v57 = vrot.slane %v796_v41, 1 }
  0xed   :  { %v812_v37 = vrot.slane %v808_v13, 2  ;;  %v824_v4 = vrot.slane %v820_v29, 2  ;;  %v2383_v56 = vmov %v2363_v25  ;;  %v759_v36 = vadd.f32 %v757_v32, %v726_v44 }
  0xee   :  { %v832_v18 = vmul.f32 %v2383_v56, %v753_v45  ;;  %v764_v60 = vadd.f32 %v762_v33, %v738_v2  ;;  %v769_v6 = vadd.f32 %v767_v63, %v750_v22  ;;  %v782_v19 = vadd.f32 %v777_v54, %v760_v50  ;;  %v844_v2 = vpop.permute.xlu0 %843 }
  0xef   :  { %v794_v9 = vadd.f32 %v789_v53, %v765_v7  ;;  %v806_v8 = vadd.f32 %v801_v40, %v770_v10  ;;  %v2388_v25 = vstv %s2224_s29  ;;  %v2389_v24 = vstv %s2226_s9 }
  0xf0   :  { %v836_v30 = vrot.slane %v832_v18, 2  ;;  %v849_v15 = vmul.f32 %v2388_v25, %v846_v28  ;;  %v818_v3 = vadd.f32 %v813_v34, %v782_v19  ;;  %v854_v1 = vmul.f32 %v2389_v24, %v846_v28 }
  0xf1   :  { %v2390_v45 = vstv %s2381_s0  ;;  %v2391_v62 = vstv %s2382_s1  ;;  %v830_v50 = vadd.f32 %v825_v11, %v794_v9  ;;  %v842_v7 = vadd.f32 %v837_v47, %v806_v8 }
  0xf2   :  { %v859_v49 = vmul.f32 %v2390_v45, %v846_v28  ;;  %v864_v21 = vmul.f32 %v2391_v62, %v846_v28  ;;  %v2393_v32 = vstv %s2384_s7  ;;  %v2394_v12 = vstv %s2385_s30 }
  0xf3   :  { %v876_v10 = vmul.f32 %v2393_v32, %v846_v28  ;;  %v888_v33 = vmul.f32 %v2394_v12, %v846_v28  ;;  %v851_v55 = vadd.f32 %v849_v15, %v818_v3  ;;  %v2395_v0 = vstv %s2386_s2 }
  0xf4   :  { %v868_v63 = vrot.slane %v864_v21, 1  ;;  %v900_v16 = vmul.f32 %v2395_v0, %v846_v28  ;;  %v2396_v61 = vstv %s2387_s21  ;;  %v856_v52 = vadd.f32 %v854_v1, %v830_v50 }
  0xf5   :  { %v912_v48 = vmul.f32 %v2396_v61, %v846_v28  ;;  %v861_v35 = vadd.f32 %v859_v49, %v842_v7  ;;  %v880_v38 = vrot.slane %v876_v10, 1  ;;  %v892_v23 = vrot.slane %v888_v33, 1 }
  0xf6   :  { %v873_v31 = vadd.f32 %v868_v63, %v851_v55  ;;  %v904_v39 = vrot.slane %v900_v16, 2  ;;  %v2397_v41 = vstv %s2392_s22  ;;  %v778_v29 = vsel %vm139_vm0, %v776_v46, %v777_v54 }
  0xf7   :  { %v916_v58 = vrot.slane %v912_v48, 2  ;;  %v924_v51 = vmul.f32 %v2397_v41, %v846_v28  ;;  %v885_v13 = vadd.f32 %v880_v38, %v856_v52  ;;  %v897_v42 = vadd.f32 %v892_v23, %v861_v35 }
  0xf8   :  { %v790_v5 = vsel %vm139_vm0, %v788_v26, %v789_v53  ;;  %v909_v44 = vadd.f32 %v904_v39, %v873_v31  ;;  %v781_v20 = vadd.f32 %v778_v29, %v759_v36  ;;  %v802_v28 = vsel %vm139_vm0, %v800_v57, %v801_v40 }
  0xf9   :  { %v928_v14 = vrot.slane %v924_v51, 2  ;;  %v793_v22 = vadd.f32 %v790_v5, %v764_v60  ;;  %v921_v56 = vadd.f32 %v916_v58, %v885_v13  ;;  %v814_v54 = vsel %vm176_vm1, %v812_v37, %v813_v34 }
  0xfa   :  { %v826_v53 = vsel %vm176_vm1, %v824_v4, %v825_v11  ;;  %v2401_v26 = vstv %s2398_s23  ;;  %v805_v36 = vadd.f32 %v802_v28, %v769_v6  ;;  %v817_v60 = vadd.f32 %v814_v54, %v781_v20 }
  0xfb   :  { %v933_v46 = vadd.f32 %v928_v14, %v897_v42  ;;  %v936_v18 = vadd.f32 %v2401_v26, %v909_v44  ;;  %v2402_v43 = vstv %s2399_s25  ;;  %v829_v9 = vadd.f32 %v826_v53, %v793_v22 }
  0xfc   :  { %v941_v19 = vadd.f32 %v2402_v43, %v921_v56  ;;  %v838_v59 = vsel %vm176_vm1, %v836_v30, %v837_v47  ;;  %v2403_v40 = vmov %v2388_v25  ;;  %v2405_v34 = vstv %s2400_s18 }
  0xfd   :  { %v848_v17 = vmul.f32 %v2403_v40, %v844_v2  ;;  %938 = vst [vmem:[%s2404_s24 + $0x8] sm:$0x3f] %v936_v18  ;;  %v947_v11 = vadd.f32 %v2405_v34, %v933_v46  ;;  %v841_v57 = vadd.f32 %v838_v59, %v805_v36  ;;  %v2406_v37 = vmov %v2389_v24 }
  0xfe   :  { %v853_v4 = vmul.f32 %v2406_v37, %v844_v2  ;;  %v2407_v6 = vmov %v2390_v45  ;;  %1044 = vst [vmem:[%s2404_s24 + $0x18] sm:$0x3f] %v941_v19  ;;  %v2408_v47 = vmov %v2391_v62  ;;  %v2409_v25 = vmov %v2393_v32 }
  0xff   :  { %v858_v8 = vmul.f32 %v2407_v6, %v844_v2  ;;  %v850_v27 = vadd.f32 %v848_v17, %v817_v60  ;;  %v863_v30 = vmul.f32 %v2408_v47, %v844_v2  ;;  %v875_v15 = vmul.f32 %v2409_v25, %v844_v2  ;;  %1046 = vst [vmem:[%s2404_s24 + $0x28] sm:$0x3f] %v947_v11 }
 0x100   :  { %v2410_v3 = vmov %v2394_v12  ;;  %v855_v1 = vadd.f32 %v853_v4, %v829_v9  ;;  %v2411_v49 = vmov %v2395_v0  ;;  %v2412_v21 = vmov %v2396_v61 }
 0x101   :  { %v887_v24 = vmul.f32 %v2410_v3, %v844_v2  ;;  %v860_v45 = vadd.f32 %v858_v8, %v841_v57  ;;  %v899_v62 = vmul.f32 %v2411_v49, %v844_v2  ;;  %v911_v50 = vmul.f32 %v2412_v21, %v844_v2 }
 0x102   :  { %v867_v7 = vrot.slane %v863_v30, 1  ;;  %v879_v32 = vrot.slane %v875_v15, 1  ;;  %v2413_v12 = vmov %v2397_v41 }
 0x103   :  { %v891_v10 = vrot.slane %v887_v24, 1  ;;  %v923_v33 = vmul.f32 %v2413_v12, %v844_v2  ;;  %v903_v55 = vrot.slane %v899_v62, 2  ;;  %v915_v0 = vrot.slane %v911_v50, 2 }
 0x104   :  { %v869_v16 = vsel %vm139_vm0, %v867_v7, %v868_v63  ;;  %v881_v61 = vsel %vm139_vm0, %v879_v32, %v880_v38  ;;  %v2414_v2 = vmov %v2401_v26  ;;  %v2415_v63 = vmov %v2402_v43 }
 0x105   :  { %v893_v48 = vsel %vm139_vm0, %v891_v10, %v892_v23  ;;  %v927_v52 = vrot.slane %v923_v33, 2  ;;  %v872_v35 = vadd.f32 %v869_v16, %v850_v27  ;;  %v884_v31 = vadd.f32 %v881_v61, %v855_v1 }
 0x106   :  { %v896_v41 = vadd.f32 %v893_v48, %v860_v45  ;;  %v905_v51 = vsel %vm176_vm1, %v903_v55, %v904_v39  ;;  %v917_v13 = vsel %vm176_vm1, %v915_v0, %v916_v58  ;;  %v2416_v38 = vmov %v2405_v34 }
 0x107   :  { %v929_v42 = vsel %vm176_vm1, %v927_v52, %v928_v14  ;;  %v908_v29 = vadd.f32 %v905_v51, %v872_v35  ;;  %v920_v5 = vadd.f32 %v917_v13, %v884_v31 }
 0x108   :  { %v932_v44 = vadd.f32 %v929_v42, %v896_v41 }
 0x109   :  { %v935_v20 = vadd.f32 %v2414_v2, %v908_v29  ;;  %v940_v22 = vadd.f32 %v2415_v63, %v920_v5 }
 0x10a   :  { %v946_v56 = vadd.f32 %v2416_v38, %v932_v44 }
 0x10b   :  { %937 = vst [vmem:[%s2404_s24] sm:$0xff] %v935_v20  ;;  %1043 = vst [vmem:[%s2404_s24 + $0x10] sm:$0xff] %v940_v22 }
 0x10c   :  { %1045 = vst [vmem:[%s2404_s24 + $0x20] sm:$0xff] %v946_v56 }
 0x10d   :  { %955 = vsyncpa [#allocation3], 1 }
 0x10e   :  { %956 = vsyncpa [#allocation5], 1 }

</bundles_post_ra>
